<compile_context>
chip_gen: v7x
topology: tpu7x:2x2x1
jax: 0.10.0
libtpu: 0.0.40
codegen_flags: <defaults>
</compile_context>

<pallas_src>
import jax
import jax.numpy as jnp
from jax.experimental import pallas as pl
from jax.experimental.pallas import tpu as pltpu


# ---------------------------------------------------------------------------
# Config (mirrors ConfigRNN)
# ---------------------------------------------------------------------------
VOCAB_SIZE = 50
EMBED_DIM = 32          # embedding_dim
HIDDEN = 32             # hidden_size
SEQ_LEN = 8             # seq_len
N_LAYERS = 2            # n_layers
BIDIRECTIONAL = False   # TODO(synk): bidirectional LSTM (reverse pass + concat) not implemented
BATCH = 16              # >= 8 so f32 sublanes are filled
CLF_HIDDEN = 32

# Layers >= 1 consume the previous layer's H-wide output through the same [E, 4H] weight
# slot, so the kernel requires E == H (fail loudly on config changes).
assert EMBED_DIM == HIDDEN, "kernel assumes embedding_dim == hidden_size for stacked layers"


# ---------------------------------------------------------------------------
# Pallas kernel: in-kernel embedding gather + stacked LSTM recurrence + classifier head
# ---------------------------------------------------------------------------
def lstm_clf_kernel(tok_ref, emb_ref, wih_ref, whh_ref, b_ref,
                    w1_ref, b1_ref, w2_ref, b2_ref,
                    out_ref, gx_scr, seq_scr):
    # tok_ref : [T*b, 1] int32  time-major token ids for this batch group
    # emb_ref : [V, E]          embedding table
    # wih_ref : [L, E, 4H]      input->gates weights (pre-transposed, gate order i,f,g,o)
    # whh_ref : [L, H, 4H]      hidden->gates weights (pre-transposed)
    # b_ref   : [L, 1, 4H]      b_ih + b_hh
    # w1_ref  : [H, 32], b1_ref: [1, 32]
    # w2_ref  : [1, 32]  (Linear(32,1) weight as a row), b2_ref: [1, 1]
    # out_ref : [b, 1]
    # gx_scr  : [T*b, 4H] f32 VMEM  hoisted input-gate projections for the current layer
    # seq_scr : [T*b, H] bf16 VMEM  staged output sequence (only layers < L-1 write it)
    b_tile = out_ref.shape[0]
    L = wih_ref.shape[0]
    H = whh_ref.shape[1]
    V = emb_ref.shape[0]
    TB = tok_ref.shape[0]
    T = TB // b_tile

    # ---- embedding gather via one-hot matmul (time-major rows, off the serial path) ----
    tok = tok_ref[...]                                            # [T*b, 1] int32
    vid = jax.lax.broadcasted_iota(jnp.int32, (TB, V), 1)
    onehot = (vid == tok).astype(jnp.float32)                     # exact 0/1 selector
    x_bf = jnp.dot(onehot, emb_ref[...],
                   preferred_element_type=jnp.float32
                   ).astype(jnp.bfloat16)                         # [T*b, E] bf16

    h = jnp.zeros((b_tile, H), jnp.float32)
    for layer in range(L):                                        # static layer loop
        # Hoisted input projection: ONE batched matmul over all T steps (+ bias fold).
        gx_scr[...] = (jnp.dot(x_bf,
                               wih_ref[layer].astype(jnp.bfloat16),
                               preferred_element_type=jnp.float32)
                       + b_ref[layer])                            # [T*b, 4H]
        whh_bf = whh_ref[layer].astype(jnp.bfloat16)              # [H, 4H]

        h = jnp.zeros((b_tile, H), jnp.float32)
        c = jnp.zeros((b_tile, H), jnp.float32)
        for t in range(T):                                        # fully unrolled (T static)
            r0 = t * b_tile
            gates = gx_scr[r0:r0 + b_tile, :] + jnp.dot(
                h.astype(jnp.bfloat16), whh_bf,
                preferred_element_type=jnp.float32)               # [b, 4H]
            sig = jax.nn.sigmoid(gates)                           # i, f, -, o lanes
            tnh = jnp.tanh(gates)                                 # -, -, g, - lanes
            c = sig[:, H:2 * H] * c + sig[:, 0:H] * tnh[:, 2 * H:3 * H]
            h = sig[:, 3 * H:4 * H] * jnp.tanh(c)
            if layer < L - 1:
                seq_scr[r0:r0 + b_tile, :] = h.astype(jnp.bfloat16)  # stage for next layer
        if layer < L - 1:
            x_bf = seq_scr[...]                                   # [T*b, H] bf16

    # Classifier head: Linear(H,32) -> Tanh -> Dropout -> Linear(32,1)
    z = jnp.tanh(jnp.dot(h.astype(jnp.bfloat16),
                         w1_ref[...].astype(jnp.bfloat16),
                         preferred_element_type=jnp.float32) + b1_ref[...])
    # TODO(synk): nn.Dropout is identity in eval mode; training-mode dropout not implemented.
    # Final [b,32] @ [32,1] done on VPU+XLU (mul + lane reduce) instead of a 1-lane MXU matmul.
    logit = jnp.sum(z * w2_ref[...], axis=-1, keepdims=True) + b2_ref[...]
    out_ref[...] = logit.astype(out_ref.dtype)


# ---------------------------------------------------------------------------
# Wrapper: batch padding / time-major token layout + pallas_call
# ---------------------------------------------------------------------------
def lstm_classifier_forward(token_ids, params):
    """token_ids: int32 [B, T] (batch_first, like the PyTorch module) -> logits f32 [B, 1]."""
    B, T = token_ids.shape
    H = HIDDEN
    L, E, _ = params["w_ih"].shape
    if L > 1:
        assert E == H, "stacked-LSTM staging requires embedding_dim == hidden_size"

    # Fill the 8-row f32 sublane dimension; split big batches into groups so the grid
    # axis ("parallel") can shard them across TensorCores on v7x.
    b_pad8 = ((B + 7) // 8) * 8
    b_tile = min(b_pad8, 64)
    n_groups = (b_pad8 + b_tile - 1) // b_tile
    b_pad = n_groups * b_tile

    tok = token_ids.astype(jnp.int32)
    if b_pad != B:
        tok = jnp.pad(tok, ((0, b_pad - B), (0, 0)))
    # group + time-major layout: row (g, t*b_tile + b) <- token_ids[g*b_tile + b, t]
    tok_tm = tok.reshape(n_groups, b_tile, T).transpose(0, 2, 1)
    tok_tm = tok_tm.reshape(n_groups * T * b_tile, 1)

    def const_spec(arr):
        nd = arr.ndim
        return pl.BlockSpec(arr.shape, lambda g, nd=nd: (0,) * nd)   # whole array, resident

    out = pl.pallas_call(
        lstm_clf_kernel,
        out_shape=jax.ShapeDtypeStruct((b_pad, 1), jnp.float32),
        grid=(n_groups,),
        in_specs=[
            pl.BlockSpec((T * b_tile, 1), lambda g: (g, 0)),         # token ids (per group)
            const_spec(params["embedding"]),
            const_spec(params["w_ih"]),
            const_spec(params["w_hh"]),
            const_spec(params["b_gates"]),
            const_spec(params["w1"]),
            const_spec(params["b1"]),
            const_spec(params["w2_row"]),
            const_spec(params["b2"]),
        ],
        out_specs=pl.BlockSpec((b_tile, 1), lambda g: (g, 0)),
        scratch_shapes=[
            pltpu.VMEM((T * b_tile, 4 * H), jnp.float32),            # hoisted gate projections
            pltpu.VMEM((T * b_tile, H), jnp.bfloat16),               # inter-layer staging (bf16)
        ],
        compiler_params=pltpu.CompilerParams(
            dimension_semantics=("parallel",)),
    )(tok_tm, params["embedding"], params["w_ih"], params["w_hh"], params["b_gates"],
      params["w1"], params["b1"], params["w2_row"], params["b2"])
    return out[:B]


# ---------------------------------------------------------------------------
# Deterministic parameter init (shapes follow nn.Embedding / nn.LSTM / nn.Linear)
# ---------------------------------------------------------------------------
def init_params(key):
    ks = jax.random.split(key, 9)
    k_lstm = 1.0 / (HIDDEN ** 0.5)

    def u(k, shape, bound):
        return jax.random.uniform(k, shape, jnp.float32, -bound, bound)

    # Embedding table [vocab, E]  (nn.Embedding init ~ N(0,1))
    embedding = jax.random.normal(ks[0], (VOCAB_SIZE, EMBED_DIM), jnp.float32)

    # LSTM weights, pre-transposed for the kernel. Gate order (i, f, g, o) as in PyTorch.
    w_ih = u(ks[1], (N_LAYERS, EMBED_DIM, 4 * HIDDEN), k_lstm)   # x @ w_ih -> [B,4H]
    w_hh = u(ks[2], (N_LAYERS, HIDDEN, 4 * HIDDEN), k_lstm)      # h @ w_hh -> [B,4H]
    b_gates = (u(ks[3], (N_LAYERS, 1, 4 * HIDDEN), k_lstm)
               + u(ks[4], (N_LAYERS, 1, 4 * HIDDEN), k_lstm))    # b_ih + b_hh

    # Classifier: Linear(H, 32) and Linear(32, 1) (second one stored as a row vector).
    k1 = 1.0 / (HIDDEN ** 0.5)
    k2 = 1.0 / (CLF_HIDDEN ** 0.5)
    w1 = u(ks[5], (HIDDEN, CLF_HIDDEN), k1)
    b1 = u(ks[6], (1, CLF_HIDDEN), k1)
    w2_row = u(ks[7], (1, CLF_HIDDEN), k2)
    b2 = u(ks[8], (1, 1), k2)

    return {
        "embedding": embedding,
        "w_ih": w_ih, "w_hh": w_hh, "b_gates": b_gates,
        "w1": w1, "b1": b1, "w2_row": w2_row, "b2": b2,
    }


if __name__ == "__main__":
    key = jax.random.PRNGKey(0)
    k_param, k_data = jax.random.split(key)

    params = init_params(k_param)
    token_ids = jax.random.randint(k_data, (BATCH, SEQ_LEN), 0, VOCAB_SIZE, jnp.int32)

    fwd = jax.jit(lstm_classifier_forward)
    logits = fwd(token_ids, params)
    jax.block_until_ready(logits)

    assert logits.shape == (BATCH, 1), logits.shape
    assert logits.dtype == jnp.float32
    assert bool(jnp.all(jnp.isfinite(logits)))
    print("KERNEL_OK")
</pallas_src>

<mosaic_0001>
module attributes {stable_mosaic.version = 11 : i64} {
  func.func @lstm_clf_kernel(%arg0: i32, %arg1: memref<128x1xi32, #tpu.memory_space<vmem>>, %arg2: memref<50x32xf32, #tpu.memory_space<vmem>>, %arg3: memref<2x32x128xf32, #tpu.memory_space<vmem>>, %arg4: memref<2x32x128xf32, #tpu.memory_space<vmem>>, %arg5: memref<2x1x128xf32, #tpu.memory_space<vmem>>, %arg6: memref<32x32xf32, #tpu.memory_space<vmem>>, %arg7: memref<1x32xf32, #tpu.memory_space<vmem>>, %arg8: memref<1x32xf32, #tpu.memory_space<vmem>>, %arg9: memref<1x1xf32, #tpu.memory_space<vmem>>, %arg10: memref<16x1xf32, #tpu.memory_space<vmem>>, %arg11: memref<128x128xf32, #tpu.memory_space<vmem>>, %arg12: memref<128x32xbf16, #tpu.memory_space<vmem>>) attributes {dimension_semantics = [#tpu.dimension_semantics<parallel>], iteration_bounds = array<i64: 1>, scalar_prefetch = 0 : i64, scratch_operands = 2 : i64, tpu.core_type = #tpu.core_type<tc>, window_params = [{transform_indices = @transform_0, window_bounds = array<i64: 128, 1>}, {pipeline_mode = #tpu.pipeline_mode<synchronous>, transform_indices = @transform_1, window_bounds = array<i64: 50, 32>}, {pipeline_mode = #tpu.pipeline_mode<synchronous>, transform_indices = @transform_2, window_bounds = array<i64: 2, 32, 128>}, {pipeline_mode = #tpu.pipeline_mode<synchronous>, transform_indices = @transform_3, window_bounds = array<i64: 2, 32, 128>}, {pipeline_mode = #tpu.pipeline_mode<synchronous>, transform_indices = @transform_4, window_bounds = array<i64: 2, 1, 128>}, {pipeline_mode = #tpu.pipeline_mode<synchronous>, transform_indices = @transform_5, window_bounds = array<i64: 32, 32>}, {pipeline_mode = #tpu.pipeline_mode<synchronous>, transform_indices = @transform_6, window_bounds = array<i64: 1, 32>}, {pipeline_mode = #tpu.pipeline_mode<synchronous>, transform_indices = @transform_7, window_bounds = array<i64: 1, 32>}, {pipeline_mode = #tpu.pipeline_mode<synchronous>, transform_indices = @transform_8, window_bounds = array<i64: 1, 1>}, {transform_indices = @transform_9, window_bounds = array<i64: 16, 1>}]} {
    %c0 = arith.constant 0 : index
    %c0_0 = arith.constant 0 : index
    %0 = vector.load %arg1[%c0, %c0_0] : memref<128x1xi32, #tpu.memory_space<vmem>>, vector<128x1xi32>
    %1 = tpu.iota {dimensions = array<i32: 1>} : vector<128x50xi32>
    %2 = vector.broadcast %0 : vector<128x1xi32> to vector<128x50xi32>
    %3 = arith.cmpi eq, %1, %2 : vector<128x50xi32>
    %4 = arith.extui %3 : vector<128x50xi1> to vector<128x50xi32>
    %5 = arith.sitofp %4 : vector<128x50xi32> to vector<128x50xf32>
    %c0_1 = arith.constant 0 : index
    %c0_2 = arith.constant 0 : index
    %6 = vector.load %arg2[%c0_1, %c0_2] : memref<50x32xf32, #tpu.memory_space<vmem>>, vector<50x32xf32>
    %cst = arith.constant dense<0.000000e+00> : vector<128x32xf32>
    %7 = tpu.matmul %5, %6, %cst {dimension_numbers = #tpu.dot_dimension_numbers<[1], [0], [0], [1], [0, 0, 1, 1], [], []>} : vector<128x50xf32>, vector<50x32xf32>, vector<128x32xf32> -> vector<128x32xf32>
    %8 = arith.truncf %7 : vector<128x32xf32> to vector<128x32xbf16>
    %c0_3 = arith.constant 0 : index
    %c0_4 = arith.constant 0 : index
    %c0_5 = arith.constant 0 : index
    %9 = vector.load %arg3[%c0_3, %c0_4, %c0_5] : memref<2x32x128xf32, #tpu.memory_space<vmem>>, vector<1x32x128xf32>
    %10 = vector.shape_cast %9 : vector<1x32x128xf32> to vector<32x128xf32>
    %11 = arith.truncf %10 : vector<32x128xf32> to vector<32x128xbf16>
    %cst_6 = arith.constant dense<0.000000e+00> : vector<128x128xf32>
    %12 = tpu.matmul %8, %11, %cst_6 {dimension_numbers = #tpu.dot_dimension_numbers<[1], [0], [0], [1], [0, 0, 1, 1], [], []>} : vector<128x32xbf16>, vector<32x128xbf16>, vector<128x128xf32> -> vector<128x128xf32>
    %c0_7 = arith.constant 0 : index
    %c0_8 = arith.constant 0 : index
    %c0_9 = arith.constant 0 : index
    %13 = vector.load %arg5[%c0_7, %c0_8, %c0_9] : memref<2x1x128xf32, #tpu.memory_space<vmem>>, vector<1x1x128xf32>
    %14 = vector.shape_cast %13 : vector<1x1x128xf32> to vector<1x128xf32>
    %15 = vector.broadcast %14 : vector<1x128xf32> to vector<128x128xf32>
    %16 = arith.addf %12, %15 : vector<128x128xf32>
    %c0_10 = arith.constant 0 : index
    %c0_11 = arith.constant 0 : index
    %17 = vector.load %arg11[%c0_10, %c0_11] : memref<128x128xf32, #tpu.memory_space<vmem>>, vector<128x128xf32>
    tpu.vector_store %arg11[%c0_10, %c0_11], %16 {strides = array<i32>} : memref<128x128xf32, #tpu.memory_space<vmem>>, vector<128x128xf32>,
    %c0_12 = arith.constant 0 : index
    %c0_13 = arith.constant 0 : index
    %c0_14 = arith.constant 0 : index
    %18 = vector.load %arg4[%c0_12, %c0_13, %c0_14] : memref<2x32x128xf32, #tpu.memory_space<vmem>>, vector<1x32x128xf32>
    %19 = vector.shape_cast %18 : vector<1x32x128xf32> to vector<32x128xf32>
    %20 = arith.truncf %19 : vector<32x128xf32> to vector<32x128xbf16>
    %cst_15 = arith.constant 0.000000e+00 : f32
    %21 = vector.broadcast %cst_15 : f32 to vector<16x32xf32>
    %cst_16 = arith.constant 0.000000e+00 : f32
    %22 = vector.broadcast %cst_16 : f32 to vector<16x32xf32>
    %c0_17 = arith.constant 0 : index
    %c0_18 = arith.constant 0 : index
    %23 = vector.load %arg11[%c0_17, %c0_18] : memref<128x128xf32, #tpu.memory_space<vmem>>, vector<16x128xf32>
    %24 = arith.truncf %21 : vector<16x32xf32> to vector<16x32xbf16>
    %cst_19 = arith.constant dense<0.000000e+00> : vector<16x128xf32>
    %25 = tpu.matmul %24, %20, %cst_19 {dimension_numbers = #tpu.dot_dimension_numbers<[1], [0], [0], [1], [0, 0, 1, 1], [], []>} : vector<16x32xbf16>, vector<32x128xbf16>, vector<16x128xf32> -> vector<16x128xf32>
    %26 = arith.addf %23, %25 : vector<16x128xf32>
    %27 = arith.negf %26 : vector<16x128xf32>
    %28 = math.exp %27 : vector<16x128xf32>
    %cst_20 = arith.constant 1.000000e+00 : f32
    %29 = vector.broadcast %cst_20 : f32 to vector<16x128xf32>
    %30 = arith.addf %29, %28 : vector<16x128xf32>
    %31 = arith.divf %29, %30 : vector<16x128xf32>
    %32 = math.tanh %26 : vector<16x128xf32>
    %33 = vector.extract_strided_slice %31 {offsets = [0, 32], sizes = [16, 32], strides = [1, 1]} : vector<16x128xf32> to vector<16x32xf32>
    %34 = arith.mulf %33, %22 : vector<16x32xf32>
    %35 = vector.extract_strided_slice %31 {offsets = [0, 0], sizes = [16, 32], strides = [1, 1]} : vector<16x128xf32> to vector<16x32xf32>
    %36 = vector.extract_strided_slice %32 {offsets = [0, 64], sizes = [16, 32], strides = [1, 1]} : vector<16x128xf32> to vector<16x32xf32>
    %37 = arith.mulf %35, %36 : vector<16x32xf32>
    %38 = arith.addf %34, %37 : vector<16x32xf32>
    %39 = vector.extract_strided_slice %31 {offsets = [0, 96], sizes = [16, 32], strides = [1, 1]} : vector<16x128xf32> to vector<16x32xf32>
    %40 = math.tanh %38 : vector<16x32xf32>
    %41 = arith.mulf %39, %40 : vector<16x32xf32>
    %42 = arith.truncf %41 : vector<16x32xf32> to vector<16x32xbf16>
    %c0_21 = arith.constant 0 : index
    %c0_22 = arith.constant 0 : index
    %43 = vector.load %arg12[%c0_21, %c0_22] : memref<128x32xbf16, #tpu.memory_space<vmem>>, vector<16x32xbf16>
    tpu.vector_store %arg12[%c0_21, %c0_22], %42 {strides = array<i32>} : memref<128x32xbf16, #tpu.memory_space<vmem>>, vector<16x32xbf16>,
    %c16 = arith.constant 16 : index
    %c0_23 = arith.constant 0 : index
    %44 = vector.load %arg11[%c16, %c0_23] : memref<128x128xf32, #tpu.memory_space<vmem>>, vector<16x128xf32>
    %45 = arith.truncf %41 : vector<16x32xf32> to vector<16x32xbf16>
    %cst_24 = arith.constant dense<0.000000e+00> : vector<16x128xf32>
    %46 = tpu.matmul %45, %20, %cst_24 {dimension_numbers = #tpu.dot_dimension_numbers<[1], [0], [0], [1], [0, 0, 1, 1], [], []>} : vector<16x32xbf16>, vector<32x128xbf16>, vector<16x128xf32> -> vector<16x128xf32>
    %47 = arith.addf %44, %46 : vector<16x128xf32>
    %48 = arith.negf %47 : vector<16x128xf32>
    %49 = math.exp %48 : vector<16x128xf32>
    %cst_25 = arith.constant 1.000000e+00 : f32
    %50 = vector.broadcast %cst_25 : f32 to vector<16x128xf32>
    %51 = arith.addf %50, %49 : vector<16x128xf32>
    %52 = arith.divf %50, %51 : vector<16x128xf32>
    %53 = math.tanh %47 : vector<16x128xf32>
    %54 = vector.extract_strided_slice %52 {offsets = [0, 32], sizes = [16, 32], strides = [1, 1]} : vector<16x128xf32> to vector<16x32xf32>
    %55 = arith.mulf %54, %38 : vector<16x32xf32>
    %56 = vector.extract_strided_slice %52 {offsets = [0, 0], sizes = [16, 32], strides = [1, 1]} : vector<16x128xf32> to vector<16x32xf32>
    %57 = vector.extract_strided_slice %53 {offsets = [0, 64], sizes = [16, 32], strides = [1, 1]} : vector<16x128xf32> to vector<16x32xf32>
    %58 = arith.mulf %56, %57 : vector<16x32xf32>
    %59 = arith.addf %55, %58 : vector<16x32xf32>
    %60 = vector.extract_strided_slice %52 {offsets = [0, 96], sizes = [16, 32], strides = [1, 1]} : vector<16x128xf32> to vector<16x32xf32>
    %61 = math.tanh %59 : vector<16x32xf32>
    %62 = arith.mulf %60, %61 : vector<16x32xf32>
    %63 = arith.truncf %62 : vector<16x32xf32> to vector<16x32xbf16>
    %c16_26 = arith.constant 16 : index
    %c0_27 = arith.constant 0 : index
    %64 = vector.load %arg12[%c16_26, %c0_27] : memref<128x32xbf16, #tpu.memory_space<vmem>>, vector<16x32xbf16>
    tpu.vector_store %arg12[%c16_26, %c0_27], %63 {strides = array<i32>} : memref<128x32xbf16, #tpu.memory_space<vmem>>, vector<16x32xbf16>,
    %c32 = arith.constant 32 : index
    %c0_28 = arith.constant 0 : index
    %65 = vector.load %arg11[%c32, %c0_28] : memref<128x128xf32, #tpu.memory_space<vmem>>, vector<16x128xf32>
    %66 = arith.truncf %62 : vector<16x32xf32> to vector<16x32xbf16>
    %cst_29 = arith.constant dense<0.000000e+00> : vector<16x128xf32>
    %67 = tpu.matmul %66, %20, %cst_29 {dimension_numbers = #tpu.dot_dimension_numbers<[1], [0], [0], [1], [0, 0, 1, 1], [], []>} : vector<16x32xbf16>, vector<32x128xbf16>, vector<16x128xf32> -> vector<16x128xf32>
    %68 = arith.addf %65, %67 : vector<16x128xf32>
    %69 = arith.negf %68 : vector<16x128xf32>
    %70 = math.exp %69 : vector<16x128xf32>
    %cst_30 = arith.constant 1.000000e+00 : f32
    %71 = vector.broadcast %cst_30 : f32 to vector<16x128xf32>
    %72 = arith.addf %71, %70 : vector<16x128xf32>
    %73 = arith.divf %71, %72 : vector<16x128xf32>
    %74 = math.tanh %68 : vector<16x128xf32>
    %75 = vector.extract_strided_slice %73 {offsets = [0, 32], sizes = [16, 32], strides = [1, 1]} : vector<16x128xf32> to vector<16x32xf32>
    %76 = arith.mulf %75, %59 : vector<16x32xf32>
    %77 = vector.extract_strided_slice %73 {offsets = [0, 0], sizes = [16, 32], strides = [1, 1]} : vector<16x128xf32> to vector<16x32xf32>
    %78 = vector.extract_strided_slice %74 {offsets = [0, 64], sizes = [16, 32], strides = [1, 1]} : vector<16x128xf32> to vector<16x32xf32>
    %79 = arith.mulf %77, %78 : vector<16x32xf32>
    %80 = arith.addf %76, %79 : vector<16x32xf32>
    %81 = vector.extract_strided_slice %73 {offsets = [0, 96], sizes = [16, 32], strides = [1, 1]} : vector<16x128xf32> to vector<16x32xf32>
    %82 = math.tanh %80 : vector<16x32xf32>
    %83 = arith.mulf %81, %82 : vector<16x32xf32>
    %84 = arith.truncf %83 : vector<16x32xf32> to vector<16x32xbf16>
    %c32_31 = arith.constant 32 : index
    %c0_32 = arith.constant 0 : index
    %85 = vector.load %arg12[%c32_31, %c0_32] : memref<128x32xbf16, #tpu.memory_space<vmem>>, vector<16x32xbf16>
    tpu.vector_store %arg12[%c32_31, %c0_32], %84 {strides = array<i32>} : memref<128x32xbf16, #tpu.memory_space<vmem>>, vector<16x32xbf16>,
    %c48 = arith.constant 48 : index
    %c0_33 = arith.constant 0 : index
    %86 = vector.load %arg11[%c48, %c0_33] : memref<128x128xf32, #tpu.memory_space<vmem>>, vector<16x128xf32>
    %87 = arith.truncf %83 : vector<16x32xf32> to vector<16x32xbf16>
    %cst_34 = arith.constant dense<0.000000e+00> : vector<16x128xf32>
    %88 = tpu.matmul %87, %20, %cst_34 {dimension_numbers = #tpu.dot_dimension_numbers<[1], [0], [0], [1], [0, 0, 1, 1], [], []>} : vector<16x32xbf16>, vector<32x128xbf16>, vector<16x128xf32> -> vector<16x128xf32>
    %89 = arith.addf %86, %88 : vector<16x128xf32>
    %90 = arith.negf %89 : vector<16x128xf32>
    %91 = math.exp %90 : vector<16x128xf32>
    %cst_35 = arith.constant 1.000000e+00 : f32
    %92 = vector.broadcast %cst_35 : f32 to vector<16x128xf32>
    %93 = arith.addf %92, %91 : vector<16x128xf32>
    %94 = arith.divf %92, %93 : vector<16x128xf32>
    %95 = math.tanh %89 : vector<16x128xf32>
    %96 = vector.extract_strided_slice %94 {offsets = [0, 32], sizes = [16, 32], strides = [1, 1]} : vector<16x128xf32> to vector<16x32xf32>
    %97 = arith.mulf %96, %80 : vector<16x32xf32>
    %98 = vector.extract_strided_slice %94 {offsets = [0, 0], sizes = [16, 32], strides = [1, 1]} : vector<16x128xf32> to vector<16x32xf32>
    %99 = vector.extract_strided_slice %95 {offsets = [0, 64], sizes = [16, 32], strides = [1, 1]} : vector<16x128xf32> to vector<16x32xf32>
    %100 = arith.mulf %98, %99 : vector<16x32xf32>
    %101 = arith.addf %97, %100 : vector<16x32xf32>
    %102 = vector.extract_strided_slice %94 {offsets = [0, 96], sizes = [16, 32], strides = [1, 1]} : vector<16x128xf32> to vector<16x32xf32>
    %103 = math.tanh %101 : vector<16x32xf32>
    %104 = arith.mulf %102, %103 : vector<16x32xf32>
    %105 = arith.truncf %104 : vector<16x32xf32> to vector<16x32xbf16>
    %c48_36 = arith.constant 48 : index
    %c0_37 = arith.constant 0 : index
    %106 = vector.load %arg12[%c48_36, %c0_37] : memref<128x32xbf16, #tpu.memory_space<vmem>>, vector<16x32xbf16>
    tpu.vector_store %arg12[%c48_36, %c0_37], %105 {strides = array<i32>} : memref<128x32xbf16, #tpu.memory_space<vmem>>, vector<16x32xbf16>,
    %c64 = arith.constant 64 : index
    %c0_38 = arith.constant 0 : index
    %107 = vector.load %arg11[%c64, %c0_38] : memref<128x128xf32, #tpu.memory_space<vmem>>, vector<16x128xf32>
    %108 = arith.truncf %104 : vector<16x32xf32> to vector<16x32xbf16>
    %cst_39 = arith.constant dense<0.000000e+00> : vector<16x128xf32>
    %109 = tpu.matmul %108, %20, %cst_39 {dimension_numbers = #tpu.dot_dimension_numbers<[1], [0], [0], [1], [0, 0, 1, 1], [], []>} : vector<16x32xbf16>, vector<32x128xbf16>, vector<16x128xf32> -> vector<16x128xf32>
    %110 = arith.addf %107, %109 : vector<16x128xf32>
    %111 = arith.negf %110 : vector<16x128xf32>
    %112 = math.exp %111 : vector<16x128xf32>
    %cst_40 = arith.constant 1.000000e+00 : f32
    %113 = vector.broadcast %cst_40 : f32 to vector<16x128xf32>
    %114 = arith.addf %113, %112 : vector<16x128xf32>
    %115 = arith.divf %113, %114 : vector<16x128xf32>
    %116 = math.tanh %110 : vector<16x128xf32>
    %117 = vector.extract_strided_slice %115 {offsets = [0, 32], sizes = [16, 32], strides = [1, 1]} : vector<16x128xf32> to vector<16x32xf32>
    %118 = arith.mulf %117, %101 : vector<16x32xf32>
    %119 = vector.extract_strided_slice %115 {offsets = [0, 0], sizes = [16, 32], strides = [1, 1]} : vector<16x128xf32> to vector<16x32xf32>
    %120 = vector.extract_strided_slice %116 {offsets = [0, 64], sizes = [16, 32], strides = [1, 1]} : vector<16x128xf32> to vector<16x32xf32>
    %121 = arith.mulf %119, %120 : vector<16x32xf32>
    %122 = arith.addf %118, %121 : vector<16x32xf32>
    %123 = vector.extract_strided_slice %115 {offsets = [0, 96], sizes = [16, 32], strides = [1, 1]} : vector<16x128xf32> to vector<16x32xf32>
    %124 = math.tanh %122 : vector<16x32xf32>
    %125 = arith.mulf %123, %124 : vector<16x32xf32>
    %126 = arith.truncf %125 : vector<16x32xf32> to vector<16x32xbf16>
    %c64_41 = arith.constant 64 : index
    %c0_42 = arith.constant 0 : index
    %127 = vector.load %arg12[%c64_41, %c0_42] : memref<128x32xbf16, #tpu.memory_space<vmem>>, vector<16x32xbf16>
    tpu.vector_store %arg12[%c64_41, %c0_42], %126 {strides = array<i32>} : memref<128x32xbf16, #tpu.memory_space<vmem>>, vector<16x32xbf16>,
    %c80 = arith.constant 80 : index
    %c0_43 = arith.constant 0 : index
    %128 = vector.load %arg11[%c80, %c0_43] : memref<128x128xf32, #tpu.memory_space<vmem>>, vector<16x128xf32>
    %129 = arith.truncf %125 : vector<16x32xf32> to vector<16x32xbf16>
    %cst_44 = arith.constant dense<0.000000e+00> : vector<16x128xf32>
    %130 = tpu.matmul %129, %20, %cst_44 {dimension_numbers = #tpu.dot_dimension_numbers<[1], [0], [0], [1], [0, 0, 1, 1], [], []>} : vector<16x32xbf16>, vector<32x128xbf16>, vector<16x128xf32> -> vector<16x128xf32>
    %131 = arith.addf %128, %130 : vector<16x128xf32>
    %132 = arith.negf %131 : vector<16x128xf32>
    %133 = math.exp %132 : vector<16x128xf32>
    %cst_45 = arith.constant 1.000000e+00 : f32
    %134 = vector.broadcast %cst_45 : f32 to vector<16x128xf32>
    %135 = arith.addf %134, %133 : vector<16x128xf32>
    %136 = arith.divf %134, %135 : vector<16x128xf32>
    %137 = math.tanh %131 : vector<16x128xf32>
    %138 = vector.extract_strided_slice %136 {offsets = [0, 32], sizes = [16, 32], strides = [1, 1]} : vector<16x128xf32> to vector<16x32xf32>
    %139 = arith.mulf %138, %122 : vector<16x32xf32>
    %140 = vector.extract_strided_slice %136 {offsets = [0, 0], sizes = [16, 32], strides = [1, 1]} : vector<16x128xf32> to vector<16x32xf32>
    %141 = vector.extract_strided_slice %137 {offsets = [0, 64], sizes = [16, 32], strides = [1, 1]} : vector<16x128xf32> to vector<16x32xf32>
    %142 = arith.mulf %140, %141 : vector<16x32xf32>
    %143 = arith.addf %139, %142 : vector<16x32xf32>
    %144 = vector.extract_strided_slice %136 {offsets = [0, 96], sizes = [16, 32], strides = [1, 1]} : vector<16x128xf32> to vector<16x32xf32>
    %145 = math.tanh %143 : vector<16x32xf32>
    %146 = arith.mulf %144, %145 : vector<16x32xf32>
    %147 = arith.truncf %146 : vector<16x32xf32> to vector<16x32xbf16>
    %c80_46 = arith.constant 80 : index
    %c0_47 = arith.constant 0 : index
    %148 = vector.load %arg12[%c80_46, %c0_47] : memref<128x32xbf16, #tpu.memory_space<vmem>>, vector<16x32xbf16>
    tpu.vector_store %arg12[%c80_46, %c0_47], %147 {strides = array<i32>} : memref<128x32xbf16, #tpu.memory_space<vmem>>, vector<16x32xbf16>,
    %c96 = arith.constant 96 : index
    %c0_48 = arith.constant 0 : index
    %149 = vector.load %arg11[%c96, %c0_48] : memref<128x128xf32, #tpu.memory_space<vmem>>, vector<16x128xf32>
    %150 = arith.truncf %146 : vector<16x32xf32> to vector<16x32xbf16>
    %cst_49 = arith.constant dense<0.000000e+00> : vector<16x128xf32>
    %151 = tpu.matmul %150, %20, %cst_49 {dimension_numbers = #tpu.dot_dimension_numbers<[1], [0], [0], [1], [0, 0, 1, 1], [], []>} : vector<16x32xbf16>, vector<32x128xbf16>, vector<16x128xf32> -> vector<16x128xf32>
    %152 = arith.addf %149, %151 : vector<16x128xf32>
    %153 = arith.negf %152 : vector<16x128xf32>
    %154 = math.exp %153 : vector<16x128xf32>
    %cst_50 = arith.constant 1.000000e+00 : f32
    %155 = vector.broadcast %cst_50 : f32 to vector<16x128xf32>
    %156 = arith.addf %155, %154 : vector<16x128xf32>
    %157 = arith.divf %155, %156 : vector<16x128xf32>
    %158 = math.tanh %152 : vector<16x128xf32>
    %159 = vector.extract_strided_slice %157 {offsets = [0, 32], sizes = [16, 32], strides = [1, 1]} : vector<16x128xf32> to vector<16x32xf32>
    %160 = arith.mulf %159, %143 : vector<16x32xf32>
    %161 = vector.extract_strided_slice %157 {offsets = [0, 0], sizes = [16, 32], strides = [1, 1]} : vector<16x128xf32> to vector<16x32xf32>
    %162 = vector.extract_strided_slice %158 {offsets = [0, 64], sizes = [16, 32], strides = [1, 1]} : vector<16x128xf32> to vector<16x32xf32>
    %163 = arith.mulf %161, %162 : vector<16x32xf32>
    %164 = arith.addf %160, %163 : vector<16x32xf32>
    %165 = vector.extract_strided_slice %157 {offsets = [0, 96], sizes = [16, 32], strides = [1, 1]} : vector<16x128xf32> to vector<16x32xf32>
    %166 = math.tanh %164 : vector<16x32xf32>
    %167 = arith.mulf %165, %166 : vector<16x32xf32>
    %168 = arith.truncf %167 : vector<16x32xf32> to vector<16x32xbf16>
    %c96_51 = arith.constant 96 : index
    %c0_52 = arith.constant 0 : index
    %169 = vector.load %arg12[%c96_51, %c0_52] : memref<128x32xbf16, #tpu.memory_space<vmem>>, vector<16x32xbf16>
    tpu.vector_store %arg12[%c96_51, %c0_52], %168 {strides = array<i32>} : memref<128x32xbf16, #tpu.memory_space<vmem>>, vector<16x32xbf16>,
    %c112 = arith.constant 112 : index
    %c0_53 = arith.constant 0 : index
    %170 = vector.load %arg11[%c112, %c0_53] : memref<128x128xf32, #tpu.memory_space<vmem>>, vector<16x128xf32>
    %171 = arith.truncf %167 : vector<16x32xf32> to vector<16x32xbf16>
    %cst_54 = arith.constant dense<0.000000e+00> : vector<16x128xf32>
    %172 = tpu.matmul %171, %20, %cst_54 {dimension_numbers = #tpu.dot_dimension_numbers<[1], [0], [0], [1], [0, 0, 1, 1], [], []>} : vector<16x32xbf16>, vector<32x128xbf16>, vector<16x128xf32> -> vector<16x128xf32>
    %173 = arith.addf %170, %172 : vector<16x128xf32>
    %174 = arith.negf %173 : vector<16x128xf32>
    %175 = math.exp %174 : vector<16x128xf32>
    %cst_55 = arith.constant 1.000000e+00 : f32
    %176 = vector.broadcast %cst_55 : f32 to vector<16x128xf32>
    %177 = arith.addf %176, %175 : vector<16x128xf32>
    %178 = arith.divf %176, %177 : vector<16x128xf32>
    %179 = math.tanh %173 : vector<16x128xf32>
    %180 = vector.extract_strided_slice %178 {offsets = [0, 32], sizes = [16, 32], strides = [1, 1]} : vector<16x128xf32> to vector<16x32xf32>
    %181 = arith.mulf %180, %164 : vector<16x32xf32>
    %182 = vector.extract_strided_slice %178 {offsets = [0, 0], sizes = [16, 32], strides = [1, 1]} : vector<16x128xf32> to vector<16x32xf32>
    %183 = vector.extract_strided_slice %179 {offsets = [0, 64], sizes = [16, 32], strides = [1, 1]} : vector<16x128xf32> to vector<16x32xf32>
    %184 = arith.mulf %182, %183 : vector<16x32xf32>
    %185 = arith.addf %181, %184 : vector<16x32xf32>
    %186 = vector.extract_strided_slice %178 {offsets = [0, 96], sizes = [16, 32], strides = [1, 1]} : vector<16x128xf32> to vector<16x32xf32>
    %187 = math.tanh %185 : vector<16x32xf32>
    %188 = arith.mulf %186, %187 : vector<16x32xf32>
    %189 = arith.truncf %188 : vector<16x32xf32> to vector<16x32xbf16>
    %c112_56 = arith.constant 112 : index
    %c0_57 = arith.constant 0 : index
    %190 = vector.load %arg12[%c112_56, %c0_57] : memref<128x32xbf16, #tpu.memory_space<vmem>>, vector<16x32xbf16>
    tpu.vector_store %arg12[%c112_56, %c0_57], %189 {strides = array<i32>} : memref<128x32xbf16, #tpu.memory_space<vmem>>, vector<16x32xbf16>,
    %c0_58 = arith.constant 0 : index
    %c0_59 = arith.constant 0 : index
    %191 = vector.load %arg12[%c0_58, %c0_59] : memref<128x32xbf16, #tpu.memory_space<vmem>>, vector<128x32xbf16>
    %c1 = arith.constant 1 : index
    %c0_60 = arith.constant 0 : index
    %c0_61 = arith.constant 0 : index
    %192 = vector.load %arg3[%c1, %c0_60, %c0_61] : memref<2x32x128xf32, #tpu.memory_space<vmem>>, vector<1x32x128xf32>
    %193 = vector.shape_cast %192 : vector<1x32x128xf32> to vector<32x128xf32>
    %194 = arith.truncf %193 : vector<32x128xf32> to vector<32x128xbf16>
    %cst_62 = arith.constant dense<0.000000e+00> : vector<128x128xf32>
    %195 = tpu.matmul %191, %194, %cst_62 {dimension_numbers = #tpu.dot_dimension_numbers<[1], [0], [0], [1], [0, 0, 1, 1], [], []>} : vector<128x32xbf16>, vector<32x128xbf16>, vector<128x128xf32> -> vector<128x128xf32>
    %c1_63 = arith.constant 1 : index
    %c0_64 = arith.constant 0 : index
    %c0_65 = arith.constant 0 : index
    %196 = vector.load %arg5[%c1_63, %c0_64, %c0_65] : memref<2x1x128xf32, #tpu.memory_space<vmem>>, vector<1x1x128xf32>
    %197 = vector.shape_cast %196 : vector<1x1x128xf32> to vector<1x128xf32>
    %198 = vector.broadcast %197 : vector<1x128xf32> to vector<128x128xf32>
    %199 = arith.addf %195, %198 : vector<128x128xf32>
    %c0_66 = arith.constant 0 : index
    %c0_67 = arith.constant 0 : index
    %200 = vector.load %arg11[%c0_66, %c0_67] : memref<128x128xf32, #tpu.memory_space<vmem>>, vector<128x128xf32>
    tpu.vector_store %arg11[%c0_66, %c0_67], %199 {strides = array<i32>} : memref<128x128xf32, #tpu.memory_space<vmem>>, vector<128x128xf32>,
    %c1_68 = arith.constant 1 : index
    %c0_69 = arith.constant 0 : index
    %c0_70 = arith.constant 0 : index
    %201 = vector.load %arg4[%c1_68, %c0_69, %c0_70] : memref<2x32x128xf32, #tpu.memory_space<vmem>>, vector<1x32x128xf32>
    %202 = vector.shape_cast %201 : vector<1x32x128xf32> to vector<32x128xf32>
    %203 = arith.truncf %202 : vector<32x128xf32> to vector<32x128xbf16>
    %cst_71 = arith.constant 0.000000e+00 : f32
    %204 = vector.broadcast %cst_71 : f32 to vector<16x32xf32>
    %cst_72 = arith.constant 0.000000e+00 : f32
    %205 = vector.broadcast %cst_72 : f32 to vector<16x32xf32>
    %c0_73 = arith.constant 0 : index
    %c0_74 = arith.constant 0 : index
    %206 = vector.load %arg11[%c0_73, %c0_74] : memref<128x128xf32, #tpu.memory_space<vmem>>, vector<16x128xf32>
    %207 = arith.truncf %204 : vector<16x32xf32> to vector<16x32xbf16>
    %cst_75 = arith.constant dense<0.000000e+00> : vector<16x128xf32>
    %208 = tpu.matmul %207, %203, %cst_75 {dimension_numbers = #tpu.dot_dimension_numbers<[1], [0], [0], [1], [0, 0, 1, 1], [], []>} : vector<16x32xbf16>, vector<32x128xbf16>, vector<16x128xf32> -> vector<16x128xf32>
    %209 = arith.addf %206, %208 : vector<16x128xf32>
    %210 = arith.negf %209 : vector<16x128xf32>
    %211 = math.exp %210 : vector<16x128xf32>
    %cst_76 = arith.constant 1.000000e+00 : f32
    %212 = vector.broadcast %cst_76 : f32 to vector<16x128xf32>
    %213 = arith.addf %212, %211 : vector<16x128xf32>
    %214 = arith.divf %212, %213 : vector<16x128xf32>
    %215 = math.tanh %209 : vector<16x128xf32>
    %216 = vector.extract_strided_slice %214 {offsets = [0, 32], sizes = [16, 32], strides = [1, 1]} : vector<16x128xf32> to vector<16x32xf32>
    %217 = arith.mulf %216, %205 : vector<16x32xf32>
    %218 = vector.extract_strided_slice %214 {offsets = [0, 0], sizes = [16, 32], strides = [1, 1]} : vector<16x128xf32> to vector<16x32xf32>
    %219 = vector.extract_strided_slice %215 {offsets = [0, 64], sizes = [16, 32], strides = [1, 1]} : vector<16x128xf32> to vector<16x32xf32>
    %220 = arith.mulf %218, %219 : vector<16x32xf32>
    %221 = arith.addf %217, %220 : vector<16x32xf32>
    %222 = vector.extract_strided_slice %214 {offsets = [0, 96], sizes = [16, 32], strides = [1, 1]} : vector<16x128xf32> to vector<16x32xf32>
    %223 = math.tanh %221 : vector<16x32xf32>
    %224 = arith.mulf %222, %223 : vector<16x32xf32>
    %c16_77 = arith.constant 16 : index
    %c0_78 = arith.constant 0 : index
    %225 = vector.load %arg11[%c16_77, %c0_78] : memref<128x128xf32, #tpu.memory_space<vmem>>, vector<16x128xf32>
    %226 = arith.truncf %224 : vector<16x32xf32> to vector<16x32xbf16>
    %cst_79 = arith.constant dense<0.000000e+00> : vector<16x128xf32>
    %227 = tpu.matmul %226, %203, %cst_79 {dimension_numbers = #tpu.dot_dimension_numbers<[1], [0], [0], [1], [0, 0, 1, 1], [], []>} : vector<16x32xbf16>, vector<32x128xbf16>, vector<16x128xf32> -> vector<16x128xf32>
    %228 = arith.addf %225, %227 : vector<16x128xf32>
    %229 = arith.negf %228 : vector<16x128xf32>
    %230 = math.exp %229 : vector<16x128xf32>
    %cst_80 = arith.constant 1.000000e+00 : f32
    %231 = vector.broadcast %cst_80 : f32 to vector<16x128xf32>
    %232 = arith.addf %231, %230 : vector<16x128xf32>
    %233 = arith.divf %231, %232 : vector<16x128xf32>
    %234 = math.tanh %228 : vector<16x128xf32>
    %235 = vector.extract_strided_slice %233 {offsets = [0, 32], sizes = [16, 32], strides = [1, 1]} : vector<16x128xf32> to vector<16x32xf32>
    %236 = arith.mulf %235, %221 : vector<16x32xf32>
    %237 = vector.extract_strided_slice %233 {offsets = [0, 0], sizes = [16, 32], strides = [1, 1]} : vector<16x128xf32> to vector<16x32xf32>
    %238 = vector.extract_strided_slice %234 {offsets = [0, 64], sizes = [16, 32], strides = [1, 1]} : vector<16x128xf32> to vector<16x32xf32>
    %239 = arith.mulf %237, %238 : vector<16x32xf32>
    %240 = arith.addf %236, %239 : vector<16x32xf32>
    %241 = vector.extract_strided_slice %233 {offsets = [0, 96], sizes = [16, 32], strides = [1, 1]} : vector<16x128xf32> to vector<16x32xf32>
    %242 = math.tanh %240 : vector<16x32xf32>
    %243 = arith.mulf %241, %242 : vector<16x32xf32>
    %c32_81 = arith.constant 32 : index
    %c0_82 = arith.constant 0 : index
    %244 = vector.load %arg11[%c32_81, %c0_82] : memref<128x128xf32, #tpu.memory_space<vmem>>, vector<16x128xf32>
    %245 = arith.truncf %243 : vector<16x32xf32> to vector<16x32xbf16>
    %cst_83 = arith.constant dense<0.000000e+00> : vector<16x128xf32>
    %246 = tpu.matmul %245, %203, %cst_83 {dimension_numbers = #tpu.dot_dimension_numbers<[1], [0], [0], [1], [0, 0, 1, 1], [], []>} : vector<16x32xbf16>, vector<32x128xbf16>, vector<16x128xf32> -> vector<16x128xf32>
    %247 = arith.addf %244, %246 : vector<16x128xf32>
    %248 = arith.negf %247 : vector<16x128xf32>
    %249 = math.exp %248 : vector<16x128xf32>
    %cst_84 = arith.constant 1.000000e+00 : f32
    %250 = vector.broadcast %cst_84 : f32 to vector<16x128xf32>
    %251 = arith.addf %250, %249 : vector<16x128xf32>
    %252 = arith.divf %250, %251 : vector<16x128xf32>
    %253 = math.tanh %247 : vector<16x128xf32>
    %254 = vector.extract_strided_slice %252 {offsets = [0, 32], sizes = [16, 32], strides = [1, 1]} : vector<16x128xf32> to vector<16x32xf32>
    %255 = arith.mulf %254, %240 : vector<16x32xf32>
    %256 = vector.extract_strided_slice %252 {offsets = [0, 0], sizes = [16, 32], strides = [1, 1]} : vector<16x128xf32> to vector<16x32xf32>
    %257 = vector.extract_strided_slice %253 {offsets = [0, 64], sizes = [16, 32], strides = [1, 1]} : vector<16x128xf32> to vector<16x32xf32>
    %258 = arith.mulf %256, %257 : vector<16x32xf32>
    %259 = arith.addf %255, %258 : vector<16x32xf32>
    %260 = vector.extract_strided_slice %252 {offsets = [0, 96], sizes = [16, 32], strides = [1, 1]} : vector<16x128xf32> to vector<16x32xf32>
    %261 = math.tanh %259 : vector<16x32xf32>
    %262 = arith.mulf %260, %261 : vector<16x32xf32>
    %c48_85 = arith.constant 48 : index
    %c0_86 = arith.constant 0 : index
    %263 = vector.load %arg11[%c48_85, %c0_86] : memref<128x128xf32, #tpu.memory_space<vmem>>, vector<16x128xf32>
    %264 = arith.truncf %262 : vector<16x32xf32> to vector<16x32xbf16>
    %cst_87 = arith.constant dense<0.000000e+00> : vector<16x128xf32>
    %265 = tpu.matmul %264, %203, %cst_87 {dimension_numbers = #tpu.dot_dimension_numbers<[1], [0], [0], [1], [0, 0, 1, 1], [], []>} : vector<16x32xbf16>, vector<32x128xbf16>, vector<16x128xf32> -> vector<16x128xf32>
    %266 = arith.addf %263, %265 : vector<16x128xf32>
    %267 = arith.negf %266 : vector<16x128xf32>
    %268 = math.exp %267 : vector<16x128xf32>
    %cst_88 = arith.constant 1.000000e+00 : f32
    %269 = vector.broadcast %cst_88 : f32 to vector<16x128xf32>
    %270 = arith.addf %269, %268 : vector<16x128xf32>
    %271 = arith.divf %269, %270 : vector<16x128xf32>
    %272 = math.tanh %266 : vector<16x128xf32>
    %273 = vector.extract_strided_slice %271 {offsets = [0, 32], sizes = [16, 32], strides = [1, 1]} : vector<16x128xf32> to vector<16x32xf32>
    %274 = arith.mulf %273, %259 : vector<16x32xf32>
    %275 = vector.extract_strided_slice %271 {offsets = [0, 0], sizes = [16, 32], strides = [1, 1]} : vector<16x128xf32> to vector<16x32xf32>
    %276 = vector.extract_strided_slice %272 {offsets = [0, 64], sizes = [16, 32], strides = [1, 1]} : vector<16x128xf32> to vector<16x32xf32>
    %277 = arith.mulf %275, %276 : vector<16x32xf32>
    %278 = arith.addf %274, %277 : vector<16x32xf32>
    %279 = vector.extract_strided_slice %271 {offsets = [0, 96], sizes = [16, 32], strides = [1, 1]} : vector<16x128xf32> to vector<16x32xf32>
    %280 = math.tanh %278 : vector<16x32xf32>
    %281 = arith.mulf %279, %280 : vector<16x32xf32>
    %c64_89 = arith.constant 64 : index
    %c0_90 = arith.constant 0 : index
    %282 = vector.load %arg11[%c64_89, %c0_90] : memref<128x128xf32, #tpu.memory_space<vmem>>, vector<16x128xf32>
    %283 = arith.truncf %281 : vector<16x32xf32> to vector<16x32xbf16>
    %cst_91 = arith.constant dense<0.000000e+00> : vector<16x128xf32>
    %284 = tpu.matmul %283, %203, %cst_91 {dimension_numbers = #tpu.dot_dimension_numbers<[1], [0], [0], [1], [0, 0, 1, 1], [], []>} : vector<16x32xbf16>, vector<32x128xbf16>, vector<16x128xf32> -> vector<16x128xf32>
    %285 = arith.addf %282, %284 : vector<16x128xf32>
    %286 = arith.negf %285 : vector<16x128xf32>
    %287 = math.exp %286 : vector<16x128xf32>
    %cst_92 = arith.constant 1.000000e+00 : f32
    %288 = vector.broadcast %cst_92 : f32 to vector<16x128xf32>
    %289 = arith.addf %288, %287 : vector<16x128xf32>
    %290 = arith.divf %288, %289 : vector<16x128xf32>
    %291 = math.tanh %285 : vector<16x128xf32>
    %292 = vector.extract_strided_slice %290 {offsets = [0, 32], sizes = [16, 32], strides = [1, 1]} : vector<16x128xf32> to vector<16x32xf32>
    %293 = arith.mulf %292, %278 : vector<16x32xf32>
    %294 = vector.extract_strided_slice %290 {offsets = [0, 0], sizes = [16, 32], strides = [1, 1]} : vector<16x128xf32> to vector<16x32xf32>
    %295 = vector.extract_strided_slice %291 {offsets = [0, 64], sizes = [16, 32], strides = [1, 1]} : vector<16x128xf32> to vector<16x32xf32>
    %296 = arith.mulf %294, %295 : vector<16x32xf32>
    %297 = arith.addf %293, %296 : vector<16x32xf32>
    %298 = vector.extract_strided_slice %290 {offsets = [0, 96], sizes = [16, 32], strides = [1, 1]} : vector<16x128xf32> to vector<16x32xf32>
    %299 = math.tanh %297 : vector<16x32xf32>
    %300 = arith.mulf %298, %299 : vector<16x32xf32>
    %c80_93 = arith.constant 80 : index
    %c0_94 = arith.constant 0 : index
    %301 = vector.load %arg11[%c80_93, %c0_94] : memref<128x128xf32, #tpu.memory_space<vmem>>, vector<16x128xf32>
    %302 = arith.truncf %300 : vector<16x32xf32> to vector<16x32xbf16>
    %cst_95 = arith.constant dense<0.000000e+00> : vector<16x128xf32>
    %303 = tpu.matmul %302, %203, %cst_95 {dimension_numbers = #tpu.dot_dimension_numbers<[1], [0], [0], [1], [0, 0, 1, 1], [], []>} : vector<16x32xbf16>, vector<32x128xbf16>, vector<16x128xf32> -> vector<16x128xf32>
    %304 = arith.addf %301, %303 : vector<16x128xf32>
    %305 = arith.negf %304 : vector<16x128xf32>
    %306 = math.exp %305 : vector<16x128xf32>
    %cst_96 = arith.constant 1.000000e+00 : f32
    %307 = vector.broadcast %cst_96 : f32 to vector<16x128xf32>
    %308 = arith.addf %307, %306 : vector<16x128xf32>
    %309 = arith.divf %307, %308 : vector<16x128xf32>
    %310 = math.tanh %304 : vector<16x128xf32>
    %311 = vector.extract_strided_slice %309 {offsets = [0, 32], sizes = [16, 32], strides = [1, 1]} : vector<16x128xf32> to vector<16x32xf32>
    %312 = arith.mulf %311, %297 : vector<16x32xf32>
    %313 = vector.extract_strided_slice %309 {offsets = [0, 0], sizes = [16, 32], strides = [1, 1]} : vector<16x128xf32> to vector<16x32xf32>
    %314 = vector.extract_strided_slice %310 {offsets = [0, 64], sizes = [16, 32], strides = [1, 1]} : vector<16x128xf32> to vector<16x32xf32>
    %315 = arith.mulf %313, %314 : vector<16x32xf32>
    %316 = arith.addf %312, %315 : vector<16x32xf32>
    %317 = vector.extract_strided_slice %309 {offsets = [0, 96], sizes = [16, 32], strides = [1, 1]} : vector<16x128xf32> to vector<16x32xf32>
    %318 = math.tanh %316 : vector<16x32xf32>
    %319 = arith.mulf %317, %318 : vector<16x32xf32>
    %c96_97 = arith.constant 96 : index
    %c0_98 = arith.constant 0 : index
    %320 = vector.load %arg11[%c96_97, %c0_98] : memref<128x128xf32, #tpu.memory_space<vmem>>, vector<16x128xf32>
    %321 = arith.truncf %319 : vector<16x32xf32> to vector<16x32xbf16>
    %cst_99 = arith.constant dense<0.000000e+00> : vector<16x128xf32>
    %322 = tpu.matmul %321, %203, %cst_99 {dimension_numbers = #tpu.dot_dimension_numbers<[1], [0], [0], [1], [0, 0, 1, 1], [], []>} : vector<16x32xbf16>, vector<32x128xbf16>, vector<16x128xf32> -> vector<16x128xf32>
    %323 = arith.addf %320, %322 : vector<16x128xf32>
    %324 = arith.negf %323 : vector<16x128xf32>
    %325 = math.exp %324 : vector<16x128xf32>
    %cst_100 = arith.constant 1.000000e+00 : f32
    %326 = vector.broadcast %cst_100 : f32 to vector<16x128xf32>
    %327 = arith.addf %326, %325 : vector<16x128xf32>
    %328 = arith.divf %326, %327 : vector<16x128xf32>
    %329 = math.tanh %323 : vector<16x128xf32>
    %330 = vector.extract_strided_slice %328 {offsets = [0, 32], sizes = [16, 32], strides = [1, 1]} : vector<16x128xf32> to vector<16x32xf32>
    %331 = arith.mulf %330, %316 : vector<16x32xf32>
    %332 = vector.extract_strided_slice %328 {offsets = [0, 0], sizes = [16, 32], strides = [1, 1]} : vector<16x128xf32> to vector<16x32xf32>
    %333 = vector.extract_strided_slice %329 {offsets = [0, 64], sizes = [16, 32], strides = [1, 1]} : vector<16x128xf32> to vector<16x32xf32>
    %334 = arith.mulf %332, %333 : vector<16x32xf32>
    %335 = arith.addf %331, %334 : vector<16x32xf32>
    %336 = vector.extract_strided_slice %328 {offsets = [0, 96], sizes = [16, 32], strides = [1, 1]} : vector<16x128xf32> to vector<16x32xf32>
    %337 = math.tanh %335 : vector<16x32xf32>
    %338 = arith.mulf %336, %337 : vector<16x32xf32>
    %c112_101 = arith.constant 112 : index
    %c0_102 = arith.constant 0 : index
    %339 = vector.load %arg11[%c112_101, %c0_102] : memref<128x128xf32, #tpu.memory_space<vmem>>, vector<16x128xf32>
    %340 = arith.truncf %338 : vector<16x32xf32> to vector<16x32xbf16>
    %cst_103 = arith.constant dense<0.000000e+00> : vector<16x128xf32>
    %341 = tpu.matmul %340, %203, %cst_103 {dimension_numbers = #tpu.dot_dimension_numbers<[1], [0], [0], [1], [0, 0, 1, 1], [], []>} : vector<16x32xbf16>, vector<32x128xbf16>, vector<16x128xf32> -> vector<16x128xf32>
    %342 = arith.addf %339, %341 : vector<16x128xf32>
    %343 = arith.negf %342 : vector<16x128xf32>
    %344 = math.exp %343 : vector<16x128xf32>
    %cst_104 = arith.constant 1.000000e+00 : f32
    %345 = vector.broadcast %cst_104 : f32 to vector<16x128xf32>
    %346 = arith.addf %345, %344 : vector<16x128xf32>
    %347 = arith.divf %345, %346 : vector<16x128xf32>
    %348 = math.tanh %342 : vector<16x128xf32>
    %349 = vector.extract_strided_slice %347 {offsets = [0, 32], sizes = [16, 32], strides = [1, 1]} : vector<16x128xf32> to vector<16x32xf32>
    %350 = arith.mulf %349, %335 : vector<16x32xf32>
    %351 = vector.extract_strided_slice %347 {offsets = [0, 0], sizes = [16, 32], strides = [1, 1]} : vector<16x128xf32> to vector<16x32xf32>
    %352 = vector.extract_strided_slice %348 {offsets = [0, 64], sizes = [16, 32], strides = [1, 1]} : vector<16x128xf32> to vector<16x32xf32>
    %353 = arith.mulf %351, %352 : vector<16x32xf32>
    %354 = arith.addf %350, %353 : vector<16x32xf32>
    %355 = vector.extract_strided_slice %347 {offsets = [0, 96], sizes = [16, 32], strides = [1, 1]} : vector<16x128xf32> to vector<16x32xf32>
    %356 = math.tanh %354 : vector<16x32xf32>
    %357 = arith.mulf %355, %356 : vector<16x32xf32>
    %358 = arith.truncf %357 : vector<16x32xf32> to vector<16x32xbf16>
    %c0_105 = arith.constant 0 : index
    %c0_106 = arith.constant 0 : index
    %359 = vector.load %arg6[%c0_105, %c0_106] : memref<32x32xf32, #tpu.memory_space<vmem>>, vector<32x32xf32>
    %360 = arith.truncf %359 : vector<32x32xf32> to vector<32x32xbf16>
    %cst_107 = arith.constant dense<0.000000e+00> : vector<16x32xf32>
    %361 = tpu.matmul %358, %360, %cst_107 {dimension_numbers = #tpu.dot_dimension_numbers<[1], [0], [0], [1], [0, 0, 1, 1], [], []>} : vector<16x32xbf16>, vector<32x32xbf16>, vector<16x32xf32> -> vector<16x32xf32>
    %c0_108 = arith.constant 0 : index
    %c0_109 = arith.constant 0 : index
    %362 = vector.load %arg7[%c0_108, %c0_109] : memref<1x32xf32, #tpu.memory_space<vmem>>, vector<1x32xf32>
    %363 = vector.broadcast %362 : vector<1x32xf32> to vector<16x32xf32>
    %364 = arith.addf %361, %363 : vector<16x32xf32>
    %365 = math.tanh %364 : vector<16x32xf32>
    %c0_110 = arith.constant 0 : index
    %c0_111 = arith.constant 0 : index
    %366 = vector.load %arg8[%c0_110, %c0_111] : memref<1x32xf32, #tpu.memory_space<vmem>>, vector<1x32xf32>
    %367 = vector.broadcast %366 : vector<1x32xf32> to vector<16x32xf32>
    %368 = arith.mulf %365, %367 : vector<16x32xf32>
    %cst_112 = arith.constant dense<0.000000e+00> : vector<16xf32>
    %369 = vector.multi_reduction <add>, %368, %cst_112 [1] : vector<16x32xf32> to vector<16xf32>
    %370 = vector.shape_cast %369 : vector<16xf32> to vector<16x1xf32>
    %c0_113 = arith.constant 0 : index
    %c0_114 = arith.constant 0 : index
    %371 = vector.load %arg9[%c0_113, %c0_114] : memref<1x1xf32, #tpu.memory_space<vmem>>, vector<1x1xf32>
    %372 = vector.broadcast %371 : vector<1x1xf32> to vector<16x1xf32>
    %373 = arith.addf %370, %372 : vector<16x1xf32>
    %c0_115 = arith.constant 0 : index
    %c0_116 = arith.constant 0 : index
    %374 = vector.load %arg10[%c0_115, %c0_116] : memref<16x1xf32, #tpu.memory_space<vmem>>, vector<16x1xf32>
    tpu.vector_store %arg10[%c0_115, %c0_116], %373 {strides = array<i32>} : memref<16x1xf32, #tpu.memory_space<vmem>>, vector<16x1xf32>,
    return
  }
  func.func @transform_0(%arg0: i32) -> (i32, i32) {
    %c0_i32 = arith.constant 0 : i32
    %c0_i32_0 = arith.constant 0 : i32
    return %arg0, %c0_i32 : i32, i32
  }
  func.func @transform_1(%arg0: i32) -> (i32, i32) {
    %c0_i32 = arith.constant 0 : i32
    %c0_i32_0 = arith.constant 0 : i32
    %c0_i32_1 = arith.constant 0 : i32
    return %c0_i32, %c0_i32_0 : i32, i32
  }
  func.func @transform_2(%arg0: i32) -> (i32, i32, i32) {
    %c0_i32 = arith.constant 0 : i32
    %c0_i32_0 = arith.constant 0 : i32
    %c0_i32_1 = arith.constant 0 : i32
    %c0_i32_2 = arith.constant 0 : i32
    return %c0_i32, %c0_i32_0, %c0_i32_1 : i32, i32, i32
  }
  func.func @transform_3(%arg0: i32) -> (i32, i32, i32) {
    %c0_i32 = arith.constant 0 : i32
    %c0_i32_0 = arith.constant 0 : i32
    %c0_i32_1 = arith.constant 0 : i32
    %c0_i32_2 = arith.constant 0 : i32
    return %c0_i32, %c0_i32_0, %c0_i32_1 : i32, i32, i32
  }
  func.func @transform_4(%arg0: i32) -> (i32, i32, i32) {
    %c0_i32 = arith.constant 0 : i32
    %c0_i32_0 = arith.constant 0 : i32
    %c0_i32_1 = arith.constant 0 : i32
    %c0_i32_2 = arith.constant 0 : i32
    return %c0_i32, %c0_i32_0, %c0_i32_1 : i32, i32, i32
  }
  func.func @transform_5(%arg0: i32) -> (i32, i32) {
    %c0_i32 = arith.constant 0 : i32
    %c0_i32_0 = arith.constant 0 : i32
    %c0_i32_1 = arith.constant 0 : i32
    return %c0_i32, %c0_i32_0 : i32, i32
  }
  func.func @transform_6(%arg0: i32) -> (i32, i32) {
    %c0_i32 = arith.constant 0 : i32
    %c0_i32_0 = arith.constant 0 : i32
    %c0_i32_1 = arith.constant 0 : i32
    return %c0_i32, %c0_i32_0 : i32, i32
  }
  func.func @transform_7(%arg0: i32) -> (i32, i32) {
    %c0_i32 = arith.constant 0 : i32
    %c0_i32_0 = arith.constant 0 : i32
    %c0_i32_1 = arith.constant 0 : i32
    return %c0_i32, %c0_i32_0 : i32, i32
  }
  func.func @transform_8(%arg0: i32) -> (i32, i32) {
    %c0_i32 = arith.constant 0 : i32
    %c0_i32_0 = arith.constant 0 : i32
    %c0_i32_1 = arith.constant 0 : i32
    return %c0_i32, %c0_i32_0 : i32, i32
  }
  func.func @transform_9(%arg0: i32) -> (i32, i32) {
    %c0_i32 = arith.constant 0 : i32
    %c0_i32_0 = arith.constant 0 : i32
    return %arg0, %c0_i32 : i32, i32
  }
}

</mosaic_0001>

<bundles_post_ra>
// kernel: lstm_classifier_forward.1
= control target key start
LH: loop header
LB: loop body
LE: loop exit
PB: predicated region body
PF: predicated region fallthrough
CT: control target
= control target key end

     0   :  { %v3086_v0 = vmov 0   ;;  %vm205_vm0 = vcmask 1041408   ;;  %v3087_v25 = vmov 0.0   ;;  %v51_v31 = vlaneseq  ;;  %s3089_s28 = smov 64   ;;  %s3090_s29 = smov 32   ;;  %s3754_s0 = inlined_call_operand.vmem [shape: s32[128,1], index: 0, kind: input, shape index: {}]   ;;  %s3755_s1 = inlined_call_operand.vmem [shape: f32[50,32], index: 1, kind: input, shape index: {}]   ;;  %s3756_s2 = inlined_call_operand.vmem [shape: f32[2,32,128], index: 2, kind: input, shape index: {}]   ;;  %s3757_s3 = inlined_call_operand.vmem [shape: f32[2,32,128], index: 3, kind: input, shape index: {}]   ;;  %s3758_s4 = inlined_call_operand.vmem [shape: f32[2,1,128], index: 4, kind: input, shape index: {}]   ;;  %s3759_s5 = inlined_call_operand.vmem [shape: f32[32,32], index: 5, kind: input, shape index: {}]   ;;  %s3760_s8 = inlined_call_operand.<no memory space> [shape: f32[1,1], index: 8, kind: input, shape index: {}]   ;;  %s3761_s6 = inlined_call_operand.vmem [shape: f32[1,32], index: 6, kind: input, shape index: {}]   ;;  %s3762_s7 = inlined_call_operand.vmem [shape: f32[1,32], index: 7, kind: input, shape index: {}]   ;;  %s3763_s9 = inlined_call_operand.vmem [shape: f32[16,1], index: 9, kind: output, shape index: {}]  }
   0x1   :  { %2825 = vset.pattern.permute.xlu1 %v3086_v0  ;;  %2824 = vset.pattern.permute.xlu0 %v3086_v0  ;;  %v37_v1 = vld [vmem:[%s3754_s0 + $0x10] sm:$0xff]  ;;  %v35_v2 = vld [vmem:[%s3754_s0] sm:$0xff]  ;;  %v38_v3 = vld [vmem:[%s3754_s0 + $0x18] sm:$0xff]  ;;  %vm156_vm1 = vcmask 408576  }
   0x2   :  { %60 = vperm.xlu1 %2825, %v37_v1   ;;  %54 = vperm.xlu0 %2824, %v35_v2   ;;  %v36_v4 = vld [vmem:[%s3754_s0 + $0x8] sm:$0xff]  ;;  %v149_v6 = vld [vmem:[%s3755_s1] sm:$0xff]  ;;  %v151_v10 = vld [vmem:[%s3755_s1 + $0x10] sm:$0xff]  ;;  %v3219_v32 = vand.u32 127, %v51_v31 }
   0x3   :  { %v40_v5 = vld [vmem:[%s3754_s0 + $0x28] sm:$0xff]  ;;  %v39_v8 = vld [vmem:[%s3754_s0 + $0x20] sm:$0xff]  ;;  %v152_v11 = vld [vmem:[%s3755_s1 + $0x18] sm:$0xff] }
   0x4   :  { %v150_v7 = vld [vmem:[%s3755_s1 + $0x8] sm:$0xff]  ;;  %v2811_v12 = vpack.c.bf16 %v152_v11, %v151_v10  ;;  %v153_v13 = vld [vmem:[%s3755_s1 + $0x20] sm:$0xff]  ;;  %v42_v15 = vld [vmem:[%s3754_s0 + $0x38] sm:$0xff] }
   0x5   :  { %v2807_v9 = vpack.c.bf16 %v150_v7, %v149_v6  ;;  %v154_v14 = vld [vmem:[%s3755_s1 + $0x28] sm:$0xff]  ;;  %v41_v16 = vld [vmem:[%s3754_s0 + $0x30] sm:$0xff]  ;;  %v43_v19 = vld [vmem:[%s3754_s0 + $0x40] sm:$0xff] }
   0x6   :  { %63 = vperm.xlu1 %2825, %v38_v3   ;;  %57 = vperm.xlu0 %2824, %v36_v4   ;;  %v2815_v17 = vpack.c.bf16 %v154_v14, %v153_v13  ;;  %v44_v18 = vld [vmem:[%s3754_s0 + $0x48] sm:$0xff]  ;;  %v155_v20 = vld [vmem:[%s3755_s1 + $0x30] sm:$0x3]  ;;  %v46_v21 = vld [vmem:[%s3754_s0 + $0x58] sm:$0xff] }
   0x7   :  { %2808 = vmatprep.subr.bf16.mxu0 %v2807_v9  ;;  %v45_v22 = vld [vmem:[%s3754_s0 + $0x50] sm:$0xff]  ;;  %v48_v23 = vld [vmem:[%s3754_s0 + $0x68] sm:$0xff]  ;;  %v47_v24 = vld [vmem:[%s3754_s0 + $0x60] sm:$0xff] }
   0x8   :  { %2810 = vmatpush3.bf16.msra.mxu0 %v2807_v9  ;;  %v50_v26 = vld [vmem:[%s3754_s0 + $0x78] sm:$0xff]  ;;  %v49_v27 = vld [vmem:[%s3754_s0 + $0x70] sm:$0xff]  ;;  %v362_v28 = vld [vmem:[%s3756_s2] sm:$0xff] }
   0x9   :  { %2812 = vmatprep.subr.bf16.mxu0 %v2811_v12  ;;  %v363_v29 = vld [vmem:[%s3756_s2 + $0x8] sm:$0xff]  ;;  %v364_v2 = vld [vmem:[%s3756_s2 + $0x10] sm:$0xff]  ;;  %v365_v3 = vld [vmem:[%s3756_s2 + $0x18] sm:$0xff] }
   0xa   :  { %69 = vperm.xlu1 %2825, %v40_v5   ;;  %66 = vperm.xlu0 %2824, %v39_v8   ;;  %v366_v30 = vpack.c.bf16 %v363_v29, %v362_v28  ;;  %v367_v4 = vpack.c.bf16 %v365_v3, %v364_v2  ;;  %v513_v5 = vld [vmem:[%s3757_s3] sm:$0xff]  ;;  %v514_v6 = vld [vmem:[%s3757_s3 + $0x8] sm:$0xff]  ;;  %v515_v8 = vld [vmem:[%s3757_s3 + $0x10] sm:$0xff] }
   0xb   :  { %v3282_v7 = vpack.c.bf16 %v514_v6, %v513_v5  ;;  %v516_v9 = vld [vmem:[%s3757_s3 + $0x18] sm:$0xff] }
   0xc   :  { %2814 = vmatpush3.bf16.msra.mxu0 %v2811_v12  ;;  %2631 = vmatprep.subr.bf16.mxu1 %v366_v30  ;;  %v3292_v10 = vpack.c.bf16 %v516_v9, %v515_v8 }
   0xd   :  { %2816 = vmatprep.subr.bf16.mxu0 %v2815_v17  ;;  %2632 = vmatpush3.bf16.msra.mxu1 %v366_v30 }
   0xe   :  { %75 = vperm.xlu1 %2825, %v42_v15   ;;  %72 = vperm.xlu0 %2824, %v41_v16  }
   0xf   :  { %2633 = vmatprep.subr.bf16.mxu1 %v367_v4 }
  0x10   :  { %2818 = vmatpush3.bf16.msra.mxu0 %v2815_v17 }
  0x11   :  { %2605 = vmatprep.subr.msk.mxu0 %vm205_vm0, %v155_v20  ;;  %2634 = vmatpush3.bf16.msra.mxu1 %v367_v4 }
  0x12   :  { %81 = vperm.xlu1 %2825, %v44_v18   ;;  %78 = vperm.xlu0 %2824, %v43_v19  }
  0x13   :  { %2651 = vmatprep.subr.bf16.mxu1 %v3087_v25 }
  0x14   :  { %2606 = vmatpush3.msk.msra.mxu0 %vm205_vm0, %v155_v20 }
  0x15   :  { %2659 = vmatprep.subr.bf16.mxu0 %v3087_v25 }
  0x16   :  { %87 = vperm.xlu1 %2825, %v46_v21   ;;  %84 = vperm.xlu0 %2824, %v45_v22  }
  0x1a   :  { %93 = vperm.xlu1 %2825, %v48_v23   ;;  %90 = vperm.xlu0 %2824, %v47_v24  }
  0x1e   :  { %99 = vperm.xlu1 %2825, %v50_v26   ;;  %96 = vperm.xlu0 %2824, %v49_v27  }
  0x81   :  { %v61_v33 = vpop.permute.xlu1 %60  ;;  %v55_v34 = vpop.permute.xlu0 %54 }
  0x82   :  { %vm101_vm2 = vcmp.eq.s32.totalorder %v3219_v32, %v55_v34  ;;  %vm103_vm3 = vcmp.eq.s32.totalorder %v3219_v32, %v61_v33 }
  0x83   :  { %v2389_v35 = vsel %vm101_vm2, 1.0, %v3087_v25  ;;  %v2391_v38 = vsel %vm103_vm3, 1.0, %v3087_v25  ;;  %vm375_vm3 = vcmask 261120  }
  0x84   :  { %2607 = vmatprep.mubr.msk.f32.mxu0 %vm156_vm1, %v2389_v35 }
  0x85   :  { %v64_v36 = vpop.permute.xlu1 %63  ;;  %v58_v37 = vpop.permute.xlu0 %57 }
  0x86   :  { %vm102_vm4 = vcmp.eq.s32.totalorder %v3219_v32, %v58_v37  ;;  %vm104_vm5 = vcmp.eq.s32.totalorder %v3219_v32, %v64_v36  ;;  %v2422_v36 = vld [vmem:[%s3758_s4] ss:$0 sm:$0xff] }
  0x87   :  { %v2390_v39 = vsel %vm102_vm4, 1.0, %v3087_v25  ;;  %v2392_v42 = vsel %vm104_vm5, 1.0, %v3087_v25  ;;  %vm2382_vm4 = vcmask 7168  }
  0x88   :  { %2608 = vmatmul.mubr.msk.f32.vlgmr.msra.gmra.mrb[0].mxu0 %vm156_vm1, %v2390_v39 }
  0x89   :  { %v70_v40 = vpop.permute.xlu1 %69  ;;  %2610 = vmatprep.mubr.msk.f32.mxu0 %vm156_vm1, %v2391_v38  ;;  %v67_v41 = vpop.permute.xlu0 %66  ;;  %2660 = vmatpush3.bf16.msra.mxu0 %v3282_v7 }
  0x8a   :  { %vm105_vm6 = vcmp.eq.s32.totalorder %v3219_v32, %v67_v41  ;;  %vm106_vm7 = vcmp.eq.s32.totalorder %v3219_v32, %v70_v40  ;;  %2661 = vmatprep.subr.bf16.mxu0 %v3087_v25 }
  0x8b   :  { %v2393_v43 = vsel %vm105_vm6, 1.0, %v3087_v25  ;;  %v2394_v46 = vsel %vm106_vm7, 1.0, %v3087_v25 }
  0x8c   :  { %2611 = vmatmul.mubr.msk.f32.gmra.mrb[2].mxu0 %vm156_vm1, %v2392_v42 }
  0x8d   :  { %v76_v44 = vpop.permute.xlu1 %75  ;;  %2613 = vmatprep.mubr.msk.f32.mxu0 %vm156_vm1, %v2393_v43  ;;  %v73_v45 = vpop.permute.xlu0 %72  ;;  %2662 = vmatpush3.bf16.msra.mxu0 %v3292_v10 }
  0x8e   :  { %vm107_vm8 = vcmp.eq.s32.totalorder %v3219_v32, %v73_v45  ;;  %vm108_vm9 = vcmp.eq.s32.totalorder %v3219_v32, %v76_v44  ;;  %2675 = vmatprep.subr.bf16.mxu0 %v3087_v25 }
  0x8f   :  { %v2395_v47 = vsel %vm107_vm8, 1.0, %v3087_v25  ;;  %v2396_v50 = vsel %vm108_vm9, 1.0, %v3087_v25 }
  0x90   :  { %2614 = vmatmul.mubr.msk.f32.gmra.mrb[4].mxu0 %vm156_vm1, %v2394_v46 }
  0x91   :  { %v82_v48 = vpop.permute.xlu1 %81  ;;  %2616 = vmatprep.mubr.msk.f32.mxu0 %vm156_vm1, %v2395_v47  ;;  %v79_v49 = vpop.permute.xlu0 %78 }
  0x92   :  { %vm109_vm10 = vcmp.eq.s32.totalorder %v3219_v32, %v79_v49  ;;  %vm110_vm11 = vcmp.eq.s32.totalorder %v3219_v32, %v82_v48 }
  0x93   :  { %v2397_v51 = vsel %vm109_vm10, 1.0, %v3087_v25  ;;  %v2398_v54 = vsel %vm110_vm11, 1.0, %v3087_v25 }
  0x94   :  { %2617 = vmatmul.mubr.msk.f32.gmra.mrb[6].mxu0 %vm156_vm1, %v2396_v50 }
  0x95   :  { %v88_v52 = vpop.permute.xlu1 %87  ;;  %2619 = vmatprep.mubr.msk.f32.mxu0 %vm156_vm1, %v2397_v51  ;;  %v85_v53 = vpop.permute.xlu0 %84 }
  0x96   :  { %vm111_vm12 = vcmp.eq.s32.totalorder %v3219_v32, %v85_v53  ;;  %vm112_vm13 = vcmp.eq.s32.totalorder %v3219_v32, %v88_v52 }
  0x97   :  { %v2399_v55 = vsel %vm111_vm12, 1.0, %v3087_v25  ;;  %v2400_v58 = vsel %vm112_vm13, 1.0, %v3087_v25 }
  0x98   :  { %2620 = vmatmul.mubr.msk.f32.gmra.mrb[8].mxu0 %vm156_vm1, %v2398_v54 }
  0x99   :  { %v94_v56 = vpop.permute.xlu1 %93  ;;  %2622 = vmatprep.mubr.msk.f32.mxu0 %vm156_vm1, %v2399_v55  ;;  %v91_v57 = vpop.permute.xlu0 %90 }
  0x9a   :  { %vm113_vm14 = vcmp.eq.s32.totalorder %v3219_v32, %v91_v57  ;;  %vm114_vm15 = vcmp.eq.s32.totalorder %v3219_v32, %v94_v56 }
  0x9b   :  { %v2401_v59 = vsel %vm113_vm14, 1.0, %v3087_v25  ;;  %v2402_v62 = vsel %vm114_vm15, 1.0, %v3087_v25 }
  0x9c   :  { %2623 = vmatmul.mubr.msk.f32.gmra.mrb[10].mxu0 %vm156_vm1, %v2400_v58 }
  0x9d   :  { %v100_v60 = vpop.permute.xlu1 %99  ;;  %2625 = vmatprep.mubr.msk.f32.mxu0 %vm156_vm1, %v2401_v59  ;;  %v97_v61 = vpop.permute.xlu0 %96 }
  0x9e   :  { %vm115_vm0 = vcmp.eq.s32.totalorder %v3219_v32, %v97_v61  ;;  %vm116_vm2 = vcmp.eq.s32.totalorder %v3219_v32, %v100_v60 }
  0x9f   :  { %v2403_v63 = vsel %vm115_vm0, 1.0, %v3087_v25  ;;  %v2404_v1 = vsel %vm116_vm2, 1.0, %v3087_v25 }
  0xa0   :  { %2626 = vmatmul.mubr.msk.f32.gmra.mrb[12].mxu0 %vm156_vm1, %v2402_v62 }
  0xa1   :  { %2628 = vmatprep.mubr.msk.f32.mxu0 %vm156_vm1, %v2403_v63 }
  0xa4   :  { %2629 = vmatmul.mubr.msk.f32.gmra.mrb[14].mxu0 %vm156_vm1, %v2404_v1  ;;  %vm3088_vm1 = vmmov 0  }
  0xa5   :  { %2663 = vmatprep.mubr.msk.bf16.mxu0 %vm3088_vm1, %v3087_v25 }
 0x15b   :  { %v2609_v11 = vpop.f32.mrb[0].mxu0 }
 0x15c   :  { %v275_v12 = vpop.f32.mrb[1].mxu0 }
 0x15d   :  { %v354_v13 = vpack.c.bf16 %v2609_v11, %v275_v12 }
 0x15f   :  { %v2612_v14 = vpop.f32.mrb[2].mxu0  ;;  %2635 = vmatprep.mubr.msk.bf16.mxu1 %vm375_vm3, %v354_v13 }
 0x160   :  { %v285_v15 = vpop.f32.mrb[3].mxu0 }
 0x161   :  { %v355_v16 = vpack.c.bf16 %v2612_v14, %v285_v15 }
 0x163   :  { %v2615_v17 = vpop.f32.mrb[4].mxu0  ;;  %2636 = vmatmul.mubr.msk.bf16.vlgmr.msra.gmra.mrb[0].mxu1 %vm375_vm3, %v355_v16 }
 0x164   :  { %2652 = vmatpush3.bf16.msra.mxu1 %v3282_v7  ;;  %v295_v18 = vpop.f32.mrb[5].mxu0 }
 0x165   :  { %v356_v19 = vpack.c.bf16 %v2615_v17, %v295_v18  ;;  %2653 = vmatprep.subr.bf16.mxu1 %v3087_v25 }
 0x167   :  { %v2618_v20 = vpop.f32.mrb[6].mxu0  ;;  %2639 = vmatprep.mubr.msk.bf16.mxu1 %vm375_vm3, %v356_v19 }
 0x168   :  { %v305_v21 = vpop.f32.mrb[7].mxu0  ;;  %2654 = vmatpush3.bf16.msra.mxu1 %v3292_v10 }
 0x169   :  { %v357_v22 = vpack.c.bf16 %v2618_v20, %v305_v21  ;;  %2667 = vmatprep.subr.bf16.mxu1 %v3087_v25 }
 0x16b   :  { %v2621_v23 = vpop.f32.mrb[8].mxu0  ;;  %2640 = vmatmul.mubr.msk.bf16.gmra.mrb[4].mxu1 %vm375_vm3, %v357_v22 }
 0x16c   :  { %v315_v24 = vpop.f32.mrb[9].mxu0 }
 0x16d   :  { %v358_v26 = vpack.c.bf16 %v2621_v23, %v315_v24 }
 0x16f   :  { %v2624_v27 = vpop.f32.mrb[10].mxu0  ;;  %2643 = vmatprep.mubr.msk.bf16.mxu1 %vm375_vm3, %v358_v26 }
 0x170   :  { %v325_v28 = vpop.f32.mrb[11].mxu0 }
 0x171   :  { %v359_v29 = vpack.c.bf16 %v2624_v27, %v325_v28 }
 0x173   :  { %v2627_v30 = vpop.f32.mrb[12].mxu0  ;;  %2644 = vmatmul.mubr.msk.bf16.gmra.mrb[8].mxu1 %vm375_vm3, %v359_v29 }
 0x174   :  { %v335_v31 = vpop.f32.mrb[13].mxu0 }
 0x175   :  { %v360_v32 = vpack.c.bf16 %v2627_v30, %v335_v31 }
 0x177   :  { %v2630_v33 = vpop.f32.mrb[14].mxu0  ;;  %2647 = vmatprep.mubr.msk.bf16.mxu1 %vm375_vm3, %v360_v32 }
 0x178   :  { %v345_v34 = vpop.f32.mrb[15].mxu0 }
 0x179   :  { %v361_v35 = vpack.c.bf16 %v2630_v33, %v345_v34 }
 0x17b   :  { %2648 = vmatmul.mubr.msk.bf16.gmra.mrb[12].mxu1 %vm375_vm3, %v361_v35 }
 0x17c   :  { %2655 = vmatprep.mubr.msk.bf16.mxu1 %vm3088_vm1, %v3087_v25 }
 0x183   :  { %2656 = vmatmul.mubr.bf16.vlgmr.msra.gmra.mrb[16].mxu1 %v3086_v0 }
 0x184   :  { %2668 = vmatpush3.bf16.msra.mxu1 %v3282_v7  ;;  %2671 = vmatprep.mubr.msk.bf16.mxu1 %vm3088_vm1, %v3087_v25 }
 0x185   :  { %2669 = vmatprep.subr.bf16.mxu1 %v3087_v25 }
 0x188   :  { %2670 = vmatpush3.bf16.msra.mxu1 %v3292_v10 }
 0x189   :  { %2683 = vmatprep.subr.bf16.mxu1 %v3087_v25 }
 0x236   :  { %v2637_v37 = vpop.f32.mrb[0].mxu1 }
 0x237   :  { %v3322_v38 = vadd.f32 %v2637_v37, %v2422_v36  ;;  %v434_v39 = vpop.f32.mrb[1].mxu1 }
 0x238   :  { %v2638_v40 = vpop.f32.mrb[2].mxu1  ;;  %v435_v4 = vadd.f32 %v2422_v36, %v434_v39 }
 0x239   :  { %v3324_v41 = vadd.f32 %v2638_v40, %v2422_v36  ;;  %v437_v42 = vpop.f32.mrb[3].mxu1 }
 0x23a   :  { %v438_v6 = vadd.f32 %v2422_v36, %v437_v42 }
 0x23e   :  { %v2641_v43 = vpop.f32.mrb[4].mxu1 }
 0x23f   :  { %v3326_v44 = vadd.f32 %v2641_v43, %v2422_v36  ;;  %v450_v45 = vpop.f32.mrb[5].mxu1 }
 0x240   :  { %v3328_v46 = vadd.f32 %v2422_v36, %v450_v45  ;;  %v2642_v47 = vpop.f32.mrb[6].mxu1 }
 0x241   :  { %v3330_v48 = vadd.f32 %v2642_v47, %v2422_v36  ;;  %v453_v49 = vpop.f32.mrb[7].mxu1 }
 0x242   :  { %v3332_v50 = vadd.f32 %v2422_v36, %v453_v49 }
 0x246   :  { %v2645_v51 = vpop.f32.mrb[8].mxu1 }
 0x247   :  { %v3334_v52 = vadd.f32 %v2645_v51, %v2422_v36  ;;  %v466_v53 = vpop.f32.mrb[9].mxu1 }
 0x248   :  { %v3336_v54 = vadd.f32 %v2422_v36, %v466_v53  ;;  %v2646_v55 = vpop.f32.mrb[10].mxu1 }
 0x249   :  { %v3338_v56 = vadd.f32 %v2646_v55, %v2422_v36  ;;  %v469_v57 = vpop.f32.mrb[11].mxu1 }
 0x24a   :  { %v3340_v58 = vadd.f32 %v2422_v36, %v469_v57 }
 0x24e   :  { %v2649_v59 = vpop.f32.mrb[12].mxu1 }
 0x24f   :  { %v3342_v60 = vadd.f32 %v2649_v59, %v2422_v36  ;;  %v482_v61 = vpop.f32.mrb[13].mxu1 }
 0x250   :  { %v3344_v62 = vadd.f32 %v2422_v36, %v482_v61  ;;  %v2650_v63 = vpop.f32.mrb[14].mxu1 }
 0x251   :  { %v3346_v1 = vadd.f32 %v2650_v63, %v2422_v36  ;;  %v485_v2 = vpop.f32.mrb[15].mxu1 }
 0x252   :  { %v3348_v3 = vadd.f32 %v2422_v36, %v485_v2 }
 0x256   :  { %v558_v5 = vpop.f32.mrb[16].mxu1 }
 0x257   :  { %v565_v8 = vadd.f32 %v558_v5, %v435_v4  ;;  %v2657_v9 = vpop.f32.mrb[17].mxu1 }
 0x258   :  { %v561_v11 = vpop.f32.mrb[18].mxu1 }
 0x259   :  { %2826 = vtanh.f32 %v565_v8  ;;  %v566_v12 = vadd.f32 %v561_v11, %v438_v6  ;;  %v2658_v13 = vpop.f32.mrb[19].mxu1  ;;  %v2431_v16 = vmul.f32 -1.442695, %v565_v8 }
 0x25b   :  { %2828 = vtanh.f32 %v566_v12  ;;  %v2432_v17 = vmul.f32 -1.442695, %v566_v12 }
 0x25c   :  { %2830 = vpow2.f32 %v2431_v16 }
 0x25d   :  { %2832 = vpow2.f32 %v2432_v17 }
 0x263   :  { %v2827_v14 = vpop.eup %2826 }
 0x264   :  { %585 = vrot.lane.b32.xlu0 %v2827_v14, %s3089_s28 }
 0x265   :  { %v2829_v15 = vpop.eup %2828 }
 0x266   :  { %587 = vrot.lane.b32.xlu1 %v2829_v15, %s3089_s28  ;;  %v2831_v18 = vpop.eup %2830 }
 0x267   :  { %v2833_v19 = vpop.eup %2832  ;;  %v573_v20 = vadd.f32 1.0, %v2831_v18 }
 0x268   :  { %v574_v21 = vadd.f32 1.0, %v2833_v19 }
 0x269   :  { %2834 = vrcp.f32 %v573_v20 }
 0x26a   :  { %2836 = vrcp.f32 %v574_v21 }
 0x273   :  { %v2835_v22 = vpop.eup %2834 }
 0x274   :  { %v2837_v26 = vpop.eup %2836  ;;  %v581_v29 = vmul.f32 0.0, %v2835_v22 }
 0x275   :  { %v582_v32 = vmul.f32 0.0, %v2837_v26 }
 0x2d6   :  { %v586_v23 = vpop.permute.xlu0 %585 }
 0x2d7   :  { %v591_v24 = vmul.f32 %v2835_v22, %v586_v23 }
 0x2d8   :  { %v588_v27 = vpop.permute.xlu1 %587 }
 0x2d9   :  { %595 = vrot.lane.b32.xlu0 %v591_v24, %s3090_s29  ;;  %v592_v28 = vmul.f32 %v2837_v26, %v588_v27 }
 0x2db   :  { %597 = vrot.lane.b32.xlu1 %v592_v28, %s3090_s29 }
 0x34b   :  { %v596_v30 = vpop.permute.xlu0 %595 }
 0x34c   :  { %v601_v31 = vadd.f32 %v596_v30, %v581_v29 }
 0x34d   :  { %v598_v33 = vpop.permute.xlu1 %597 }
 0x34e   :  { %2838 = vtanh.f32 %v601_v31  ;;  %v602_v34 = vadd.f32 %v598_v33, %v582_v32 }
 0x350   :  { %2840 = vtanh.f32 %v602_v34 }
 0x358   :  { %v2839_v35 = vpop.eup %2838 }
 0x359   :  { %607 = vrot.lane.b32.xlu0 %v2839_v35, %s3089_s28 }
 0x35a   :  { %v2841_v36 = vpop.eup %2840 }
 0x35b   :  { %609 = vrot.lane.b32.xlu1 %v2841_v36, %s3089_s28 }
 0x3cb   :  { %v608_v37 = vpop.permute.xlu0 %607 }
 0x3cc   :  { %v613_v40 = vmul.f32 %v2835_v22, %v608_v37 }
 0x3cd   :  { %v610_v39 = vpop.permute.xlu1 %609 }
 0x3ce   :  { %v614_v42 = vmul.f32 %v2837_v26, %v610_v39 }
 0x3d0   :  { %v615_v43 = vpack.c.bf16 %v614_v42, %v613_v40 }
 0x3d2   :  { %617 = vrot.lane.b32.xlu0 %v615_v43, %s3090_s29 }
 0x444   :  { %v618_v45 = vpop.permute.xlu0 %617 }
 0x445   :  { %620 = vst.msk [vmem:[#allocation3] sm:$0xff] %vm375_vm3, %v618_v45  ;;  %2664 = vmatmul.mubr.msk.bf16.vlgmr.msra.gmra.mrb[16].mxu0 %vm375_vm3, %v618_v45 }
 0x446   :  { %2676 = vmatpush3.bf16.msra.mxu0 %v3282_v7  ;;  %2679 = vmatprep.mubr.msk.bf16.mxu0 %vm3088_vm1, %v3087_v25 }
 0x447   :  { %2677 = vmatprep.subr.bf16.mxu0 %v3087_v25 }
 0x44a   :  { %2678 = vmatpush3.bf16.msra.mxu0 %v3292_v10 }
 0x44b   :  { %2691 = vmatprep.subr.bf16.mxu0 %v3087_v25 }
 0x518   :  { %v660_v47 = vpop.f32.mrb[16].mxu0 }
 0x519   :  { %v667_v49 = vadd.f32 %v660_v47, %v3322_v38  ;;  %v2665_v51 = vpop.f32.mrb[17].mxu0 }
 0x51a   :  { %v663_v53 = vpop.f32.mrb[18].mxu0 }
 0x51b   :  { %2842 = vtanh.f32 %v667_v49  ;;  %v668_v55 = vadd.f32 %v663_v53, %v3324_v41  ;;  %v2666_v57 = vpop.f32.mrb[19].mxu0  ;;  %v2434_v63 = vmul.f32 -1.442695, %v667_v49 }
 0x51d   :  { %2844 = vtanh.f32 %v668_v55  ;;  %v2435_v2 = vmul.f32 -1.442695, %v668_v55 }
 0x51e   :  { %2846 = vpow2.f32 %v2434_v63 }
 0x51f   :  { %2848 = vpow2.f32 %v2435_v2 }
 0x525   :  { %v2843_v59 = vpop.eup %2842 }
 0x526   :  { %687 = vrot.lane.b32.xlu1 %v2843_v59, %s3089_s28 }
 0x527   :  { %v2845_v61 = vpop.eup %2844 }
 0x528   :  { %689 = vrot.lane.b32.xlu0 %v2845_v61, %s3089_s28  ;;  %v2847_v4 = vpop.eup %2846 }
 0x529   :  { %v2849_v5 = vpop.eup %2848  ;;  %v675_v38 = vadd.f32 1.0, %v2847_v4 }
 0x52a   :  { %v676_v6 = vadd.f32 1.0, %v2849_v5 }
 0x52b   :  { %2850 = vrcp.f32 %v675_v38 }
 0x52c   :  { %2852 = vrcp.f32 %v676_v6 }
 0x535   :  { %v2851_v8 = vpop.eup %2850 }
 0x536   :  { %v2853_v11 = vpop.eup %2852  ;;  %v683_v14 = vmul.f32 %v2851_v8, %v601_v31 }
 0x537   :  { %v684_v17 = vmul.f32 %v2853_v11, %v602_v34 }
 0x598   :  { %v688_v41 = vpop.permute.xlu1 %687 }
 0x599   :  { %v693_v9 = vmul.f32 %v2851_v8, %v688_v41 }
 0x59a   :  { %v690_v12 = vpop.permute.xlu0 %689 }
 0x59b   :  { %697 = vrot.lane.b32.xlu1 %v693_v9, %s3090_s29  ;;  %v694_v13 = vmul.f32 %v2853_v11, %v690_v12 }
 0x59d   :  { %699 = vrot.lane.b32.xlu0 %v694_v13, %s3090_s29 }
 0x60d   :  { %v698_v15 = vpop.permute.xlu1 %697 }
 0x60e   :  { %v703_v16 = vadd.f32 %v698_v15, %v683_v14 }
 0x60f   :  { %v700_v18 = vpop.permute.xlu0 %699 }
 0x610   :  { %2854 = vtanh.f32 %v703_v16  ;;  %v704_v19 = vadd.f32 %v700_v18, %v684_v17 }
 0x612   :  { %2856 = vtanh.f32 %v704_v19 }
 0x61a   :  { %v2855_v20 = vpop.eup %2854 }
 0x61b   :  { %709 = vrot.lane.b32.xlu1 %v2855_v20, %s3089_s28 }
 0x61c   :  { %v2857_v21 = vpop.eup %2856 }
 0x61d   :  { %711 = vrot.lane.b32.xlu0 %v2857_v21, %s3089_s28 }
 0x68d   :  { %v710_v22 = vpop.permute.xlu1 %709 }
 0x68e   :  { %v715_v24 = vmul.f32 %v2851_v8, %v710_v22 }
 0x68f   :  { %v712_v23 = vpop.permute.xlu0 %711 }
 0x690   :  { %v716_v26 = vmul.f32 %v2853_v11, %v712_v23 }
 0x692   :  { %v717_v27 = vpack.c.bf16 %v716_v26, %v715_v24 }
 0x694   :  { %719 = vrot.lane.b32.xlu1 %v717_v27, %s3090_s29 }
 0x706   :  { %v720_v28 = vpop.permute.xlu1 %719 }
 0x707   :  { %722 = vst.msk [vmem:[#allocation3 + $0x8] sm:$0xff] %vm375_vm3, %v720_v28  ;;  %2672 = vmatmul.mubr.msk.bf16.vlgmr.msra.gmra.mrb[20].mxu1 %vm375_vm3, %v720_v28 }
 0x708   :  { %2684 = vmatpush3.bf16.msra.mxu1 %v3282_v7  ;;  %2687 = vmatprep.mubr.msk.bf16.mxu1 %vm3088_vm1, %v3087_v25 }
 0x709   :  { %2685 = vmatprep.subr.bf16.mxu1 %v3087_v25 }
 0x70c   :  { %2686 = vmatpush3.bf16.msra.mxu1 %v3292_v10 }
 0x70d   :  { %2699 = vmatprep.subr.bf16.mxu1 %v3087_v25 }
 0x7da   :  { %v762_v29 = vpop.f32.mrb[20].mxu1 }
 0x7db   :  { %v769_v30 = vadd.f32 %v762_v29, %v3328_v46  ;;  %v2673_v31 = vpop.f32.mrb[21].mxu1 }
 0x7dc   :  { %v765_v32 = vpop.f32.mrb[22].mxu1 }
 0x7dd   :  { %2858 = vtanh.f32 %v769_v30  ;;  %v770_v33 = vadd.f32 %v765_v32, %v3332_v50  ;;  %v2674_v34 = vpop.f32.mrb[23].mxu1  ;;  %v2437_v37 = vmul.f32 -1.442695, %v769_v30 }
 0x7df   :  { %2860 = vtanh.f32 %v770_v33  ;;  %v2438_v39 = vmul.f32 -1.442695, %v770_v33 }
 0x7e0   :  { %2862 = vpow2.f32 %v2437_v37 }
 0x7e1   :  { %2864 = vpow2.f32 %v2438_v39 }
 0x7e7   :  { %v2859_v35 = vpop.eup %2858 }
 0x7e8   :  { %789 = vrot.lane.b32.xlu0 %v2859_v35, %s3089_s28 }
 0x7e9   :  { %v2861_v36 = vpop.eup %2860 }
 0x7ea   :  { %791 = vrot.lane.b32.xlu1 %v2861_v36, %s3089_s28  ;;  %v2863_v40 = vpop.eup %2862 }
 0x7eb   :  { %v2865_v42 = vpop.eup %2864  ;;  %v777_v46 = vadd.f32 1.0, %v2863_v40 }
 0x7ec   :  { %v778_v43 = vadd.f32 1.0, %v2865_v42 }
 0x7ed   :  { %2866 = vrcp.f32 %v777_v46 }
 0x7ee   :  { %2868 = vrcp.f32 %v778_v43 }
 0x7f7   :  { %v2867_v45 = vpop.eup %2866 }
 0x7f8   :  { %v2869_v49 = vpop.eup %2868  ;;  %v785_v55 = vmul.f32 %v2867_v45, %v703_v16 }
 0x7f9   :  { %v786_v61 = vmul.f32 %v2869_v49, %v704_v19 }
 0x85a   :  { %v790_v50 = vpop.permute.xlu0 %789 }
 0x85b   :  { %v795_v47 = vmul.f32 %v2867_v45, %v790_v50 }
 0x85c   :  { %v792_v51 = vpop.permute.xlu1 %791 }
 0x85d   :  { %799 = vrot.lane.b32.xlu0 %v795_v47, %s3090_s29  ;;  %v796_v53 = vmul.f32 %v2869_v49, %v792_v51 }
 0x85f   :  { %801 = vrot.lane.b32.xlu1 %v796_v53, %s3090_s29 }
 0x8cf   :  { %v800_v57 = vpop.permute.xlu0 %799 }
 0x8d0   :  { %v805_v59 = vadd.f32 %v800_v57, %v785_v55 }
 0x8d1   :  { %v802_v63 = vpop.permute.xlu1 %801 }
 0x8d2   :  { %2870 = vtanh.f32 %v805_v59  ;;  %v806_v2 = vadd.f32 %v802_v63, %v786_v61 }
 0x8d4   :  { %2872 = vtanh.f32 %v806_v2 }
 0x8dc   :  { %v2871_v4 = vpop.eup %2870 }
 0x8dd   :  { %811 = vrot.lane.b32.xlu0 %v2871_v4, %s3089_s28 }
 0x8de   :  { %v2873_v5 = vpop.eup %2872 }
 0x8df   :  { %813 = vrot.lane.b32.xlu1 %v2873_v5, %s3089_s28 }
 0x94f   :  { %v812_v38 = vpop.permute.xlu0 %811 }
 0x950   :  { %v817_v8 = vmul.f32 %v2867_v45, %v812_v38 }
 0x951   :  { %v814_v6 = vpop.permute.xlu1 %813 }
 0x952   :  { %v818_v41 = vmul.f32 %v2869_v49, %v814_v6 }
 0x954   :  { %v819_v9 = vpack.c.bf16 %v818_v41, %v817_v8 }
 0x956   :  { %821 = vrot.lane.b32.xlu0 %v819_v9, %s3090_s29 }
 0x9c8   :  { %v822_v11 = vpop.permute.xlu0 %821 }
 0x9c9   :  { %824 = vst.msk [vmem:[#allocation3 + $0x10] sm:$0xff] %vm375_vm3, %v822_v11  ;;  %2680 = vmatmul.mubr.msk.bf16.vlgmr.msra.gmra.mrb[20].mxu0 %vm375_vm3, %v822_v11 }
 0x9ca   :  { %2692 = vmatpush3.bf16.msra.mxu0 %v3282_v7  ;;  %2695 = vmatprep.mubr.msk.bf16.mxu0 %vm3088_vm1, %v3087_v25 }
 0x9cb   :  { %2693 = vmatprep.subr.bf16.mxu0 %v3087_v25 }
 0x9ce   :  { %2694 = vmatpush3.bf16.msra.mxu0 %v3292_v10 }
 0x9cf   :  { %2707 = vmatprep.subr.bf16.mxu0 %v3087_v25 }
 0xa9c   :  { %v864_v12 = vpop.f32.mrb[20].mxu0 }
 0xa9d   :  { %v871_v13 = vadd.f32 %v864_v12, %v3326_v44  ;;  %v2681_v14 = vpop.f32.mrb[21].mxu0 }
 0xa9e   :  { %v867_v15 = vpop.f32.mrb[22].mxu0 }
 0xa9f   :  { %2874 = vtanh.f32 %v871_v13  ;;  %v872_v16 = vadd.f32 %v867_v15, %v3330_v48  ;;  %v2682_v17 = vpop.f32.mrb[23].mxu0  ;;  %v2440_v20 = vmul.f32 -1.442695, %v871_v13 }
 0xaa1   :  { %2876 = vtanh.f32 %v872_v16  ;;  %v2441_v21 = vmul.f32 -1.442695, %v872_v16 }
 0xaa2   :  { %2878 = vpow2.f32 %v2440_v20 }
 0xaa3   :  { %2880 = vpow2.f32 %v2441_v21 }
 0xaa9   :  { %v2875_v18 = vpop.eup %2874 }
 0xaaa   :  { %891 = vrot.lane.b32.xlu1 %v2875_v18, %s3089_s28 }
 0xaab   :  { %v2877_v19 = vpop.eup %2876 }
 0xaac   :  { %893 = vrot.lane.b32.xlu0 %v2877_v19, %s3089_s28  ;;  %v2879_v22 = vpop.eup %2878 }
 0xaad   :  { %v2881_v23 = vpop.eup %2880  ;;  %v879_v44 = vadd.f32 1.0, %v2879_v22 }
 0xaae   :  { %v880_v24 = vadd.f32 1.0, %v2881_v23 }
 0xaaf   :  { %2882 = vrcp.f32 %v879_v44 }
 0xab0   :  { %2884 = vrcp.f32 %v880_v24 }
 0xab9   :  { %v2883_v26 = vpop.eup %2882 }
 0xaba   :  { %v2885_v28 = vpop.eup %2884  ;;  %v887_v31 = vmul.f32 %v2883_v26, %v805_v59 }
 0xabb   :  { %v888_v34 = vmul.f32 %v2885_v28, %v806_v2 }
 0xb1c   :  { %v892_v48 = vpop.permute.xlu1 %891 }
 0xb1d   :  { %v897_v27 = vmul.f32 %v2883_v26, %v892_v48 }
 0xb1e   :  { %v894_v29 = vpop.permute.xlu0 %893 }
 0xb1f   :  { %901 = vrot.lane.b32.xlu1 %v897_v27, %s3090_s29  ;;  %v898_v30 = vmul.f32 %v2885_v28, %v894_v29 }
 0xb21   :  { %903 = vrot.lane.b32.xlu0 %v898_v30, %s3090_s29 }
 0xb91   :  { %v902_v32 = vpop.permute.xlu1 %901 }
 0xb92   :  { %v907_v33 = vadd.f32 %v902_v32, %v887_v31 }
 0xb93   :  { %v904_v35 = vpop.permute.xlu0 %903 }
 0xb94   :  { %2886 = vtanh.f32 %v907_v33  ;;  %v908_v36 = vadd.f32 %v904_v35, %v888_v34 }
 0xb96   :  { %2888 = vtanh.f32 %v908_v36 }
 0xb9e   :  { %v2887_v37 = vpop.eup %2886 }
 0xb9f   :  { %913 = vrot.lane.b32.xlu1 %v2887_v37, %s3089_s28 }
 0xba0   :  { %v2889_v39 = vpop.eup %2888 }
 0xba1   :  { %915 = vrot.lane.b32.xlu0 %v2889_v39, %s3089_s28 }
 0xc11   :  { %v914_v40 = vpop.permute.xlu1 %913 }
 0xc12   :  { %v919_v46 = vmul.f32 %v2883_v26, %v914_v40 }
 0xc13   :  { %v916_v42 = vpop.permute.xlu0 %915 }
 0xc14   :  { %v920_v43 = vmul.f32 %v2885_v28, %v916_v42 }
 0xc16   :  { %v921_v45 = vpack.c.bf16 %v920_v43, %v919_v46 }
 0xc18   :  { %923 = vrot.lane.b32.xlu1 %v921_v45, %s3090_s29 }
 0xc8a   :  { %v924_v50 = vpop.permute.xlu1 %923 }
 0xc8b   :  { %926 = vst.msk [vmem:[#allocation3 + $0x18] sm:$0xff] %vm375_vm3, %v924_v50  ;;  %2688 = vmatmul.mubr.msk.bf16.vlgmr.msra.gmra.mrb[24].mxu1 %vm375_vm3, %v924_v50 }
 0xc8c   :  { %2700 = vmatpush3.bf16.msra.mxu1 %v3282_v7  ;;  %2703 = vmatprep.mubr.msk.bf16.mxu1 %vm3088_vm1, %v3087_v25 }
 0xc8d   :  { %2701 = vmatprep.subr.bf16.mxu1 %v3087_v25 }
 0xc90   :  { %2702 = vmatpush3.bf16.msra.mxu1 %v3292_v10 }
 0xd5e   :  { %v966_v47 = vpop.f32.mrb[24].mxu1 }
 0xd5f   :  { %v973_v49 = vadd.f32 %v966_v47, %v3336_v54  ;;  %v2689_v51 = vpop.f32.mrb[25].mxu1 }
 0xd60   :  { %v969_v53 = vpop.f32.mrb[26].mxu1 }
 0xd61   :  { %2890 = vtanh.f32 %v973_v49  ;;  %v974_v55 = vadd.f32 %v969_v53, %v3340_v58  ;;  %v2690_v57 = vpop.f32.mrb[27].mxu1  ;;  %v2443_v63 = vmul.f32 -1.442695, %v973_v49 }
 0xd62   :  { %v2455_v57 = vld [vmem:[%s3756_s2 + $0x28] sm:$0xff] }
 0xd63   :  { %2892 = vtanh.f32 %v974_v55  ;;  %v2444_v2 = vmul.f32 -1.442695, %v974_v55  ;;  %v2454_v55 = vld [vmem:[%s3756_s2 + $0x20] sm:$0xff] }
 0xd64   :  { %2894 = vpow2.f32 %v2443_v63 }
 0xd65   :  { %2896 = vpow2.f32 %v2444_v2 }
 0xd6b   :  { %v2891_v59 = vpop.eup %2890 }
 0xd6c   :  { %993 = vrot.lane.b32.xlu0 %v2891_v59, %s3089_s28  ;;  %v1348_v59 = vpack.c.bf16 %v2455_v57, %v2454_v55  ;;  %v2470_v57 = vld [vmem:[%s3757_s3 + $0x30] sm:$0xff] }
 0xd6d   :  { %v2893_v61 = vpop.eup %2892 }
 0xd6e   :  { %995 = vrot.lane.b32.xlu1 %v2893_v61, %s3089_s28  ;;  %v2895_v4 = vpop.eup %2894  ;;  %2715 = vmatprep.subr.bf16.mxu1 %v1348_v59 }
 0xd6f   :  { %v2897_v5 = vpop.eup %2896  ;;  %v981_v54 = vadd.f32 1.0, %v2895_v4 }
 0xd70   :  { %v982_v38 = vadd.f32 1.0, %v2897_v5 }
 0xd71   :  { %2898 = vrcp.f32 %v981_v54  ;;  %v2456_v54 = vld [vmem:[%s3756_s2 + $0x30] sm:$0xff] }
 0xd72   :  { %2900 = vrcp.f32 %v982_v38  ;;  %v2457_v38 = vld [vmem:[%s3756_s2 + $0x38] sm:$0xff] }
 0xd7b   :  { %v2899_v6 = vpop.eup %2898 }
 0xd7c   :  { %v2901_v41 = vpop.eup %2900  ;;  %v989_v12 = vmul.f32 %v2899_v6, %v907_v33 }
 0xd7d   :  { %v990_v15 = vmul.f32 %v2901_v41, %v908_v36 }
 0xdde   :  { %v994_v58 = vpop.permute.xlu0 %993 }
 0xddf   :  { %v999_v8 = vmul.f32 %v2899_v6, %v994_v58 }
 0xde0   :  { %v996_v9 = vpop.permute.xlu1 %995 }
 0xde1   :  { %1003 = vrot.lane.b32.xlu0 %v999_v8, %s3090_s29  ;;  %v1000_v11 = vmul.f32 %v2901_v41, %v996_v9  ;;  %v1335_v8 = vld [vmem:[#allocation3] sm:$0xff]  ;;  %v1337_v9 = vld [vmem:[#allocation3 + $0x10] sm:$0xff] }
 0xde3   :  { %1005 = vrot.lane.b32.xlu1 %v1000_v11, %s3090_s29  ;;  %v1338_v11 = vld [vmem:[#allocation3 + $0x18] sm:$0xff] }
 0xe53   :  { %v1004_v13 = vpop.permute.xlu0 %1003 }
 0xe54   :  { %v1009_v14 = vadd.f32 %v1004_v13, %v989_v12 }
 0xe55   :  { %v1006_v16 = vpop.permute.xlu1 %1005 }
 0xe56   :  { %2902 = vtanh.f32 %v1009_v14  ;;  %v1010_v17 = vadd.f32 %v1006_v16, %v990_v15 }
 0xe58   :  { %2904 = vtanh.f32 %v1010_v17 }
 0xe60   :  { %v2903_v18 = vpop.eup %2902 }
 0xe61   :  { %1015 = vrot.lane.b32.xlu0 %v2903_v18, %s3089_s28 }
 0xe62   :  { %v2905_v19 = vpop.eup %2904 }
 0xe63   :  { %1017 = vrot.lane.b32.xlu1 %v2905_v19, %s3089_s28 }
 0xed3   :  { %v1016_v20 = vpop.permute.xlu0 %1015 }
 0xed4   :  { %v1021_v22 = vmul.f32 %v2899_v6, %v1016_v20  ;;  %v1349_v6 = vpack.c.bf16 %v2457_v38, %v2456_v54 }
 0xed5   :  { %v1018_v21 = vpop.permute.xlu1 %1017 }
 0xed6   :  { %v1022_v23 = vmul.f32 %v2901_v41, %v1018_v21  ;;  %v1336_v41 = vld [vmem:[#allocation3 + $0x8] sm:$0xff] }
 0xed8   :  { %v1023_v44 = vpack.c.bf16 %v1022_v23, %v1021_v22 }
 0xeda   :  { %1025 = vrot.lane.b32.xlu0 %v1023_v44, %s3090_s29 }
 0xf4c   :  { %v1026_v24 = vpop.permute.xlu0 %1025 }
 0xf4d   :  { %1028 = vst.msk [vmem:[#allocation3 + $0x20] sm:$0xff] %vm375_vm3, %v1026_v24  ;;  %2696 = vmatmul.mubr.msk.bf16.vlgmr.msra.gmra.mrb[24].mxu0 %vm375_vm3, %v1026_v24 }
 0xf4e   :  { %2708 = vmatpush3.bf16.msra.mxu0 %v3282_v7  ;;  %2711 = vmatprep.mubr.msk.bf16.mxu0 %vm3088_vm1, %v3087_v25 }
 0xf4f   :  { %2709 = vmatprep.subr.bf16.mxu0 %v3087_v25 }
 0xf52   :  { %2710 = vmatpush3.bf16.msra.mxu0 %v3292_v10 }
 0xf53   :  { %2735 = vmatprep.subr.bf16.mxu0 %v3087_v25 }
 0xf54   :  { %v1339_v12 = vld [vmem:[#allocation3 + $0x20] sm:$0xff] }
0x1020   :  { %v1068_v26 = vpop.f32.mrb[24].mxu0 }
0x1021   :  { %v1075_v48 = vadd.f32 %v1068_v26, %v3334_v52  ;;  %v2697_v27 = vpop.f32.mrb[25].mxu0 }
0x1022   :  { %v1071_v28 = vpop.f32.mrb[26].mxu0 }
0x1023   :  { %2906 = vtanh.f32 %v1075_v48  ;;  %v1076_v29 = vadd.f32 %v1071_v28, %v3338_v56  ;;  %v2698_v30 = vpop.f32.mrb[27].mxu0  ;;  %v2446_v32 = vmul.f32 -1.442695, %v1075_v48 }
0x1025   :  { %2908 = vtanh.f32 %v1076_v29  ;;  %v2447_v10 = vmul.f32 -1.442695, %v1076_v29 }
0x1026   :  { %2910 = vpow2.f32 %v2446_v32 }
0x1027   :  { %2912 = vpow2.f32 %v2447_v10 }
0x102d   :  { %v2907_v7 = vpop.eup %2906 }
0x102e   :  { %1095 = vrot.lane.b32.xlu1 %v2907_v7, %s3089_s28 }
0x102f   :  { %v2909_v31 = vpop.eup %2908 }
0x1030   :  { %1097 = vrot.lane.b32.xlu0 %v2909_v31, %s3089_s28  ;;  %v2911_v33 = vpop.eup %2910 }
0x1031   :  { %v2913_v34 = vpop.eup %2912  ;;  %v1083_v52 = vadd.f32 1.0, %v2911_v33 }
0x1032   :  { %v1084_v35 = vadd.f32 1.0, %v2913_v34 }
0x1033   :  { %2914 = vrcp.f32 %v1083_v52 }
0x1034   :  { %2916 = vrcp.f32 %v1084_v35 }
0x103d   :  { %v2915_v36 = vpop.eup %2914 }
0x103e   :  { %v2917_v39 = vpop.eup %2916  ;;  %v1091_v46 = vmul.f32 %v2915_v36, %v1009_v14 }
0x103f   :  { %v1092_v50 = vmul.f32 %v2917_v39, %v1010_v17 }
0x10a0   :  { %v1096_v56 = vpop.permute.xlu1 %1095 }
0x10a1   :  { %v1101_v37 = vmul.f32 %v2915_v36, %v1096_v56 }
0x10a2   :  { %v1098_v40 = vpop.permute.xlu0 %1097 }
0x10a3   :  { %1105 = vrot.lane.b32.xlu1 %v1101_v37, %s3090_s29  ;;  %v1102_v42 = vmul.f32 %v2917_v39, %v1098_v40 }
0x10a5   :  { %1107 = vrot.lane.b32.xlu0 %v1102_v42, %s3090_s29 }
0x1115   :  { %v1106_v43 = vpop.permute.xlu1 %1105 }
0x1116   :  { %v3438_v45 = vadd.f32 %v1106_v43, %v1091_v46 }
0x1117   :  { %v1108_v47 = vpop.permute.xlu0 %1107 }
0x1118   :  { %2918 = vtanh.f32 %v3438_v45  ;;  %v3441_v49 = vadd.f32 %v1108_v47, %v1092_v50 }
0x111a   :  { %2920 = vtanh.f32 %v3441_v49 }
0x1122   :  { %v2919_v51 = vpop.eup %2918 }
0x1123   :  { %1117 = vrot.lane.b32.xlu1 %v2919_v51, %s3089_s28 }
0x1124   :  { %v2921_v53 = vpop.eup %2920 }
0x1125   :  { %1119 = vrot.lane.b32.xlu0 %v2921_v53, %s3089_s28 }
0x1195   :  { %v1118_v61 = vpop.permute.xlu1 %1117 }
0x1196   :  { %v1123_v2 = vmul.f32 %v2915_v36, %v1118_v61 }
0x1197   :  { %v1120_v63 = vpop.permute.xlu0 %1119 }
0x1198   :  { %v1124_v4 = vmul.f32 %v2917_v39, %v1120_v63 }
0x119a   :  { %v1125_v5 = vpack.c.bf16 %v1124_v4, %v1123_v2 }
0x119c   :  { %1127 = vrot.lane.b32.xlu1 %v1125_v5, %s3090_s29 }
0x120e   :  { %v1128_v58 = vpop.permute.xlu1 %1127 }
0x120f   :  { %1130 = vst.msk [vmem:[#allocation3 + $0x28] sm:$0xff] %vm375_vm3, %v1128_v58  ;;  %2704 = vmatmul.mubr.msk.bf16.vlgmr.msra.gmra.mrb[28].mxu1 %vm375_vm3, %v1128_v58 }
0x1210   :  { %2716 = vmatpush3.bf16.msra.mxu1 %v1348_v59  ;;  %2719 = vmatprep.mubr.msk.bf16.mxu1 %vm375_vm3, %v1335_v8  ;;  %v2471_v59 = vld [vmem:[%s3757_s3 + $0x38] sm:$0xff] }
0x1211   :  { %2717 = vmatprep.subr.bf16.mxu1 %v1349_v6  ;;  %v3524_v61 = vpack.c.bf16 %v2471_v59, %v2470_v57 }
0x1214   :  { %2718 = vmatpush3.bf16.msra.mxu1 %v1349_v6 }
0x1215   :  { %2767 = vmatprep.subr.bf16.mxu1 %v3087_v25 }
0x1216   :  { %v1340_v13 = vld [vmem:[#allocation3 + $0x28] sm:$0xff] }
0x1217   :  { %2720 = vmatmul.mubr.msk.bf16.vlgmr.msra.gmra.mrb[32].mxu1 %vm375_vm3, %v1336_v41 }
0x1218   :  { %2723 = vmatprep.mubr.msk.bf16.mxu1 %vm375_vm3, %v1337_v9 }
0x121f   :  { %2724 = vmatmul.mubr.msk.bf16.gmra.mrb[36].mxu1 %vm375_vm3, %v1338_v11 }
0x1220   :  { %2727 = vmatprep.mubr.msk.bf16.mxu1 %vm375_vm3, %v1339_v12  ;;  %v3554_v12 = vld [vmem:[%s3758_s4 + $0x1] ss:$0 sm:$0xff] }
0x1227   :  { %2728 = vmatmul.mubr.msk.bf16.gmra.mrb[40].mxu1 %vm375_vm3, %v1340_v13 }
0x12e2   :  { %v1170_v14 = vpop.f32.mrb[28].mxu1 }
0x12e3   :  { %v1177_v15 = vadd.f32 %v1170_v14, %v3344_v62  ;;  %v2705_v16 = vpop.f32.mrb[29].mxu1 }
0x12e4   :  { %v1173_v17 = vpop.f32.mrb[30].mxu1 }
0x12e5   :  { %2922 = vtanh.f32 %v1177_v15  ;;  %v1178_v18 = vadd.f32 %v1173_v17, %v3348_v3  ;;  %v2706_v19 = vpop.f32.mrb[31].mxu1  ;;  %v2449_v7 = vmul.f32 -1.442695, %v1177_v15 }
0x12e7   :  { %2924 = vtanh.f32 %v1178_v18  ;;  %v2450_v31 = vmul.f32 -1.442695, %v1178_v18 }
0x12e8   :  { %2926 = vpow2.f32 %v2449_v7 }
0x12e9   :  { %2928 = vpow2.f32 %v2450_v31 }
0x12ea   :  { %v3470_v20 = vpop.f32.mrb[32].mxu1 }
0x12eb   :  { %v3472_v21 = vpop.f32.mrb[33].mxu1 }
0x12ec   :  { %v3474_v22 = vpop.f32.mrb[34].mxu1  ;;  %v1417_v13 = vadd.f32 %v3554_v12, %v3472_v21 }
0x12ed   :  { %v3476_v23 = vpop.f32.mrb[35].mxu1 }
0x12ee   :  { %v1420_v15 = vadd.f32 %v3554_v12, %v3476_v23 }
0x12ef   :  { %v2923_v44 = vpop.eup %2922 }
0x12f0   :  { %1197 = vrot.lane.b32.xlu0 %v2923_v44, %s3089_s28 }
0x12f1   :  { %v2925_v24 = vpop.eup %2924 }
0x12f2   :  { %v3479_v62 = vpop.f32.mrb[36].mxu1  ;;  %1199 = vrot.lane.b32.xlu1 %v2925_v24, %s3089_s28  ;;  %v2927_v32 = vpop.eup %2926 }
0x12f3   :  { %v3482_v26 = vpop.f32.mrb[37].mxu1  ;;  %v2929_v10 = vpop.eup %2928  ;;  %v1185_v33 = vadd.f32 1.0, %v2927_v32 }
0x12f4   :  { %v3484_v3 = vpop.f32.mrb[38].mxu1  ;;  %v1186_v34 = vadd.f32 1.0, %v2929_v10 }
0x12f5   :  { %v3486_v48 = vpop.f32.mrb[39].mxu1  ;;  %2930 = vrcp.f32 %v1185_v33 }
0x12f6   :  { %2932 = vrcp.f32 %v1186_v34 }
0x12fa   :  { %v3488_v27 = vpop.f32.mrb[40].mxu1 }
0x12fb   :  { %v3490_v28 = vpop.f32.mrb[41].mxu1 }
0x12fc   :  { %v3492_v29 = vpop.f32.mrb[42].mxu1 }
0x12fd   :  { %v3494_v30 = vpop.f32.mrb[43].mxu1 }
0x12ff   :  { %v2931_v52 = vpop.eup %2930 }
0x1300   :  { %v2933_v56 = vpop.eup %2932  ;;  %v1193_v40 = vmul.f32 %v2931_v52, %v3438_v45  ;;  %v2468_v45 = vld [vmem:[%s3757_s3 + $0x20] sm:$0xff] }
0x1301   :  { %v1194_v43 = vmul.f32 %v2933_v56, %v3441_v49  ;;  %v2469_v49 = vld [vmem:[%s3757_s3 + $0x28] sm:$0xff] }
0x1302   :  { %v3514_v55 = vpack.c.bf16 %v2469_v49, %v2468_v45 }
0x1304   :  { %2768 = vmatpush3.bf16.msra.mxu1 %v3514_v55 }
0x1305   :  { %2769 = vmatprep.subr.bf16.mxu1 %v3087_v25 }
0x1308   :  { %2770 = vmatpush3.bf16.msra.mxu1 %v3524_v61 }
0x1309   :  { %2783 = vmatprep.subr.bf16.mxu1 %v3087_v25 }
0x1362   :  { %v1198_v35 = vpop.permute.xlu0 %1197 }
0x1363   :  { %v1203_v36 = vmul.f32 %v2931_v52, %v1198_v35 }
0x1364   :  { %v1200_v37 = vpop.permute.xlu1 %1199 }
0x1365   :  { %1207 = vrot.lane.b32.xlu0 %v1203_v36, %s3090_s29  ;;  %v1204_v39 = vmul.f32 %v2933_v56, %v1200_v37 }
0x1367   :  { %1209 = vrot.lane.b32.xlu1 %v1204_v39, %s3090_s29 }
0x13d7   :  { %v1208_v42 = vpop.permute.xlu0 %1207 }
0x13d8   :  { %v3499_v46 = vadd.f32 %v1208_v42, %v1193_v40 }
0x13d9   :  { %v1210_v50 = vpop.permute.xlu1 %1209 }
0x13da   :  { %2934 = vtanh.f32 %v3499_v46  ;;  %v3503_v47 = vadd.f32 %v1210_v50, %v1194_v43 }
0x13dc   :  { %2936 = vtanh.f32 %v3503_v47 }
0x13e4   :  { %v2935_v51 = vpop.eup %2934 }
0x13e5   :  { %1219 = vrot.lane.b32.xlu0 %v2935_v51, %s3089_s28 }
0x13e6   :  { %v2937_v53 = vpop.eup %2936 }
0x13e7   :  { %1221 = vrot.lane.b32.xlu1 %v2937_v53, %s3089_s28 }
0x1457   :  { %v1220_v63 = vpop.permute.xlu0 %1219 }
0x1458   :  { %v1225_v4 = vmul.f32 %v2931_v52, %v1220_v63 }
0x1459   :  { %v1222_v2 = vpop.permute.xlu1 %1221 }
0x145a   :  { %v1226_v5 = vmul.f32 %v2933_v56, %v1222_v2  ;;  %v1425_v2 = vadd.f32 %v3470_v20, %v3554_v12 }
0x145c   :  { %v1227_v54 = vpack.c.bf16 %v1226_v5, %v1225_v4  ;;  %v1428_v5 = vadd.f32 %v3474_v22, %v3554_v12 }
0x145e   :  { %1229 = vrot.lane.b32.xlu0 %v1227_v54, %s3090_s29 }
0x14d0   :  { %v1230_v38 = vpop.permute.xlu0 %1229 }
0x14d1   :  { %1232 = vst.msk [vmem:[#allocation3 + $0x30] sm:$0xff] %vm375_vm3, %v1230_v38  ;;  %2712 = vmatmul.mubr.msk.bf16.vlgmr.msra.gmra.mrb[28].mxu0 %vm375_vm3, %v1230_v38 }
0x14d2   :  { %2736 = vmatpush3.bf16.msra.mxu0 %v3514_v55  ;;  %2739 = vmatprep.mubr.msk.bf16.mxu0 %vm3088_vm1, %v3087_v25 }
0x14d3   :  { %2737 = vmatprep.subr.bf16.mxu0 %v3087_v25 }
0x14d6   :  { %2738 = vmatpush3.bf16.msra.mxu0 %v3524_v61 }
0x14d7   :  { %2743 = vmatprep.subr.bf16.mxu0 %v3087_v25 }
0x14d8   :  { %v1341_v6 = vld [vmem:[#allocation3 + $0x30] sm:$0xff] }
0x14d9   :  { %2731 = vmatprep.mubr.msk.bf16.mxu1 %vm375_vm3, %v1341_v6  ;;  %2740 = vmatmul.mubr.bf16.vlgmr.msra.gmra.mrb[32].mxu0 %v3086_v0 }
0x14da   :  { %2744 = vmatpush3.bf16.msra.mxu0 %v3514_v55  ;;  %2747 = vmatprep.mubr.msk.bf16.mxu0 %vm3088_vm1, %v3087_v25 }
0x14db   :  { %2745 = vmatprep.subr.bf16.mxu0 %v3087_v25 }
0x14de   :  { %2746 = vmatpush3.bf16.msra.mxu0 %v3524_v61 }
0x14df   :  { %2751 = vmatprep.subr.bf16.mxu0 %v3087_v25 }
0x15a4   :  { %v1272_v58 = vpop.f32.mrb[28].mxu0 }
0x15a5   :  { %v3546_v8 = vadd.f32 %v1272_v58, %v3342_v60  ;;  %v2713_v41 = vpop.f32.mrb[29].mxu0 }
0x15a6   :  { %v1275_v9 = vpop.f32.mrb[30].mxu0 }
0x15a7   :  { %v3549_v11 = vadd.f32 %v1275_v9, %v3346_v1  ;;  %v2714_v0 = vpop.f32.mrb[31].mxu0 }
0x15ac   :  { %v1538_v14 = vpop.f32.mrb[32].mxu0 }
0x15ad   :  { %v1545_v60 = vadd.f32 %v1538_v14, %v1417_v13  ;;  %v2741_v16 = vpop.f32.mrb[33].mxu0 }
0x15ae   :  { %v1541_v17 = vpop.f32.mrb[34].mxu0 }
0x15af   :  { %2938 = vtanh.f32 %v1545_v60  ;;  %v1546_v18 = vadd.f32 %v1541_v17, %v1420_v15  ;;  %v2742_v1 = vpop.f32.mrb[35].mxu0  ;;  %v2472_v24 = vmul.f32 -1.442695, %v1545_v60 }
0x15b1   :  { %2940 = vtanh.f32 %v1546_v18  ;;  %v2473_v7 = vmul.f32 -1.442695, %v1546_v18 }
0x15b2   :  { %2942 = vpow2.f32 %v2472_v24 }
0x15b3   :  { %2944 = vpow2.f32 %v2473_v7 }
0x15b9   :  { %v2939_v19 = vpop.eup %2938 }
0x15ba   :  { %1565 = vrot.lane.b32.xlu1 %v2939_v19, %s3089_s28 }
0x15bb   :  { %v2941_v44 = vpop.eup %2940 }
0x15bc   :  { %1567 = vrot.lane.b32.xlu0 %v2941_v44, %s3089_s28  ;;  %v2943_v21 = vpop.eup %2942 }
0x15bd   :  { %v2945_v31 = vpop.eup %2944  ;;  %v1553_v23 = vadd.f32 1.0, %v2943_v21 }
0x15be   :  { %v1554_v32 = vadd.f32 1.0, %v2945_v31 }
0x15bf   :  { %2946 = vrcp.f32 %v1553_v23 }
0x15c0   :  { %2948 = vrcp.f32 %v1554_v32 }
0x15c9   :  { %v2947_v10 = vpop.eup %2946 }
0x15ca   :  { %v2949_v52 = vpop.eup %2948  ;;  %v1561_v56 = vmul.f32 0.0, %v2947_v10 }
0x15cb   :  { %v1562_v40 = vmul.f32 0.0, %v2949_v52 }
0x162c   :  { %v1566_v33 = vpop.permute.xlu1 %1565 }
0x162d   :  { %v1571_v34 = vmul.f32 %v2947_v10, %v1566_v33 }
0x162e   :  { %v1568_v35 = vpop.permute.xlu0 %1567 }
0x162f   :  { %1575 = vrot.lane.b32.xlu1 %v1571_v34, %s3090_s29  ;;  %v1572_v36 = vmul.f32 %v2949_v52, %v1568_v35 }
0x1631   :  { %1577 = vrot.lane.b32.xlu0 %v1572_v36, %s3090_s29 }
0x16a1   :  { %v1576_v37 = vpop.permute.xlu1 %1575 }
0x16a2   :  { %v1581_v39 = vadd.f32 %v1576_v37, %v1561_v56 }
0x16a3   :  { %v1578_v42 = vpop.permute.xlu0 %1577 }
0x16a4   :  { %2950 = vtanh.f32 %v1581_v39  ;;  %v1582_v43 = vadd.f32 %v1578_v42, %v1562_v40  ;;  %v1436_v42 = vadd.f32 %v3554_v12, %v3486_v48 }
0x16a6   :  { %2952 = vtanh.f32 %v1582_v43 }
0x16ae   :  { %v2951_v50 = vpop.eup %2950 }
0x16af   :  { %1587 = vrot.lane.b32.xlu1 %v2951_v50, %s3089_s28 }
0x16b0   :  { %v2953_v51 = vpop.eup %2952 }
0x16b1   :  { %1589 = vrot.lane.b32.xlu0 %v2953_v51, %s3089_s28 }
0x1721   :  { %v1588_v53 = vpop.permute.xlu1 %1587 }
0x1722   :  { %v1593_v49 = vmul.f32 %v2947_v10, %v1588_v53 }
0x1723   :  { %v1590_v45 = vpop.permute.xlu0 %1589 }
0x1724   :  { %v1594_v57 = vmul.f32 %v2949_v52, %v1590_v45 }
0x1726   :  { %v1597_v59 = vpack.c.bf16 %v1594_v57, %v1593_v49 }
0x1728   :  { %1599 = vrot.lane.b32.xlu1 %v1597_v59, %s3090_s29 }
0x179a   :  { %v1600_v63 = vpop.permute.xlu1 %1599 }
0x179b   :  { %2748 = vmatmul.mubr.msk.bf16.vlgmr.msra.gmra.mrb[36].mxu0 %vm375_vm3, %v1600_v63 }
0x179c   :  { %2752 = vmatpush3.bf16.msra.mxu0 %v3514_v55  ;;  %2755 = vmatprep.mubr.msk.bf16.mxu0 %vm3088_vm1, %v3087_v25 }
0x179d   :  { %2753 = vmatprep.subr.bf16.mxu0 %v3087_v25 }
0x17a0   :  { %2754 = vmatpush3.bf16.msra.mxu0 %v3524_v61 }
0x17a1   :  { %2759 = vmatprep.subr.bf16.mxu0 %v3087_v25 }
0x186e   :  { %v1638_v4 = vpop.f32.mrb[36].mxu0 }
0x186f   :  { %v1645_v54 = vadd.f32 %v1638_v4, %v1425_v2  ;;  %v2749_v38 = vpop.f32.mrb[37].mxu0 }
0x1870   :  { %v1641_v6 = vpop.f32.mrb[38].mxu0 }
0x1871   :  { %2954 = vtanh.f32 %v1645_v54  ;;  %v1646_v58 = vadd.f32 %v1641_v6, %v1428_v5  ;;  %v2750_v41 = vpop.f32.mrb[39].mxu0  ;;  %v2475_v13 = vmul.f32 -1.442695, %v1645_v54 }
0x1873   :  { %2956 = vtanh.f32 %v1646_v58  ;;  %v2476_v14 = vmul.f32 -1.442695, %v1646_v58 }
0x1874   :  { %2958 = vpow2.f32 %v2475_v13 }
0x1875   :  { %2960 = vpow2.f32 %v2476_v14 }
0x187b   :  { %v2955_v9 = vpop.eup %2954 }
0x187c   :  { %1665 = vrot.lane.b32.xlu0 %v2955_v9, %s3089_s28 }
0x187d   :  { %v2957_v0 = vpop.eup %2956 }
0x187e   :  { %1667 = vrot.lane.b32.xlu1 %v2957_v0, %s3089_s28  ;;  %v2959_v20 = vpop.eup %2958 }
0x187f   :  { %v2961_v15 = vpop.eup %2960  ;;  %v1653_v22 = vadd.f32 1.0, %v2959_v20 }
0x1880   :  { %v1654_v60 = vadd.f32 1.0, %v2961_v15 }
0x1881   :  { %2962 = vrcp.f32 %v1653_v22 }
0x1882   :  { %2964 = vrcp.f32 %v1654_v60 }
0x188b   :  { %v2963_v16 = vpop.eup %2962 }
0x188c   :  { %v2965_v1 = vpop.eup %2964  ;;  %v1661_v24 = vmul.f32 %v2963_v16, %v1581_v39  ;;  %v1433_v39 = vadd.f32 %v3554_v12, %v3482_v26 }
0x188d   :  { %v1662_v31 = vmul.f32 %v2965_v1, %v1582_v43 }
0x18ee   :  { %v1666_v17 = vpop.permute.xlu0 %1665 }
0x18ef   :  { %v1671_v18 = vmul.f32 %v2963_v16, %v1666_v17 }
0x18f0   :  { %v1668_v19 = vpop.permute.xlu1 %1667 }
0x18f1   :  { %1675 = vrot.lane.b32.xlu0 %v1671_v18, %s3090_s29  ;;  %v1672_v44 = vmul.f32 %v2965_v1, %v1668_v19 }
0x18f3   :  { %1677 = vrot.lane.b32.xlu1 %v1672_v44, %s3090_s29 }
0x1963   :  { %v1676_v7 = vpop.permute.xlu0 %1675 }
0x1964   :  { %v1681_v21 = vadd.f32 %v1676_v7, %v1661_v24 }
0x1965   :  { %v1678_v23 = vpop.permute.xlu1 %1677 }
0x1966   :  { %2966 = vtanh.f32 %v1681_v21  ;;  %v1682_v32 = vadd.f32 %v1678_v23, %v1662_v31  ;;  %v2453_v31 = vmul.f32 -1.442695, %v3549_v11 }
0x1968   :  { %2968 = vtanh.f32 %v1682_v32 }
0x1970   :  { %v2967_v10 = vpop.eup %2966 }
0x1971   :  { %1687 = vrot.lane.b32.xlu0 %v2967_v10, %s3089_s28 }
0x1972   :  { %v2969_v33 = vpop.eup %2968 }
0x1973   :  { %1689 = vrot.lane.b32.xlu1 %v2969_v33, %s3089_s28 }
0x19e3   :  { %v1688_v34 = vpop.permute.xlu0 %1687 }
0x19e4   :  { %v1693_v35 = vmul.f32 %v2963_v16, %v1688_v34  ;;  %v1444_v34 = vadd.f32 %v3484_v3, %v3554_v12 }
0x19e5   :  { %v1690_v52 = vpop.permute.xlu1 %1689 }
0x19e6   :  { %v1694_v36 = vmul.f32 %v2965_v1, %v1690_v52 }
0x19e8   :  { %v1697_v56 = vpack.c.bf16 %v1694_v36, %v1693_v35 }
0x19ea   :  { %1699 = vrot.lane.b32.xlu0 %v1697_v56, %s3090_s29 }
0x1a5c   :  { %v1700_v37 = vpop.permute.xlu0 %1699 }
0x1a5d   :  { %2756 = vmatmul.mubr.msk.bf16.vlgmr.msra.gmra.mrb[40].mxu0 %vm375_vm3, %v1700_v37 }
0x1a5e   :  { %2760 = vmatpush3.bf16.msra.mxu0 %v3514_v55  ;;  %2763 = vmatprep.mubr.msk.bf16.mxu0 %vm3088_vm1, %v3087_v25 }
0x1a5f   :  { %2761 = vmatprep.subr.bf16.mxu0 %v3087_v25 }
0x1a62   :  { %2762 = vmatpush3.bf16.msra.mxu0 %v3524_v61 }
0x1a63   :  { %2775 = vmatprep.subr.bf16.mxu0 %v3087_v25 }
0x1b30   :  { %v1738_v40 = vpop.f32.mrb[40].mxu0 }
0x1b31   :  { %v1745_v43 = vadd.f32 %v1738_v40, %v1433_v39  ;;  %v2757_v50 = vpop.f32.mrb[41].mxu0 }
0x1b32   :  { %v1741_v51 = vpop.f32.mrb[42].mxu0 }
0x1b33   :  { %2970 = vtanh.f32 %v1745_v43  ;;  %v1746_v53 = vadd.f32 %v1741_v51, %v1436_v42  ;;  %v2758_v45 = vpop.f32.mrb[43].mxu0  ;;  %v2478_v59 = vmul.f32 -1.442695, %v1745_v43 }
0x1b35   :  { %2972 = vtanh.f32 %v1746_v53  ;;  %v2479_v63 = vmul.f32 -1.442695, %v1746_v53 }
0x1b36   :  { %2974 = vpow2.f32 %v2478_v59 }
0x1b37   :  { %2976 = vpow2.f32 %v2479_v63 }
0x1b3d   :  { %v2971_v49 = vpop.eup %2970 }
0x1b3e   :  { %1765 = vrot.lane.b32.xlu1 %v2971_v49, %s3089_s28 }
0x1b3f   :  { %v2973_v57 = vpop.eup %2972 }
0x1b40   :  { %1767 = vrot.lane.b32.xlu0 %v2973_v57, %s3089_s28  ;;  %v2975_v26 = vpop.eup %2974 }
0x1b41   :  { %v2977_v2 = vpop.eup %2976  ;;  %v1753_v48 = vadd.f32 1.0, %v2975_v26 }
0x1b42   :  { %v1754_v4 = vadd.f32 1.0, %v2977_v2 }
0x1b43   :  { %2978 = vrcp.f32 %v1753_v48 }
0x1b44   :  { %2980 = vrcp.f32 %v1754_v4 }
0x1b4d   :  { %v2979_v5 = vpop.eup %2978 }
0x1b4e   :  { %v2981_v6 = vpop.eup %2980  ;;  %v1761_v9 = vmul.f32 %v2979_v5, %v1681_v21  ;;  %v2452_v21 = vmul.f32 -1.442695, %v3546_v8 }
0x1b4f   :  { %v1762_v14 = vmul.f32 %v2981_v6, %v1682_v32  ;;  %v1441_v32 = vadd.f32 %v3479_v62, %v3554_v12 }
0x1bb0   :  { %v1766_v54 = vpop.permute.xlu1 %1765 }
0x1bb1   :  { %v1771_v38 = vmul.f32 %v2979_v5, %v1766_v54 }
0x1bb2   :  { %v1768_v58 = vpop.permute.xlu0 %1767 }
0x1bb3   :  { %1775 = vrot.lane.b32.xlu1 %v1771_v38, %s3090_s29  ;;  %v1772_v41 = vmul.f32 %v2981_v6, %v1768_v58 }
0x1bb5   :  { %1777 = vrot.lane.b32.xlu0 %v1772_v41, %s3090_s29 }
0x1c25   :  { %v1776_v0 = vpop.permute.xlu1 %1775 }
0x1c26   :  { %v3600_v13 = vadd.f32 %v1776_v0, %v1761_v9 }
0x1c27   :  { %v1778_v20 = vpop.permute.xlu0 %1777 }
0x1c28   :  { %2982 = vtanh.f32 %v3600_v13  ;;  %v3603_v15 = vadd.f32 %v1778_v20, %v1762_v14 }
0x1c2a   :  { %2984 = vtanh.f32 %v3603_v15 }
0x1c2b   :  { %2986 = vtanh.f32 %v3546_v8 }
0x1c2c   :  { %2988 = vtanh.f32 %v3549_v11 }
0x1c2d   :  { %2990 = vpow2.f32 %v2452_v21 }
0x1c2e   :  { %2992 = vpow2.f32 %v2453_v31 }
0x1c32   :  { %v2983_v22 = vpop.eup %2982 }
0x1c33   :  { %1787 = vrot.lane.b32.xlu1 %v2983_v22, %s3089_s28 }
0x1c34   :  { %v2985_v60 = vpop.eup %2984 }
0x1c35   :  { %1789 = vrot.lane.b32.xlu0 %v2985_v60, %s3089_s28  ;;  %v2987_v16 = vpop.eup %2986 }
0x1c36   :  { %v2989_v24 = vpop.eup %2988 }
0x1c37   :  { %v2991_v23 = vpop.eup %2990 }
0x1c38   :  { %v2993_v33 = vpop.eup %2992  ;;  %v1287_v52 = vadd.f32 1.0, %v2991_v23 }
0x1c39   :  { %1299 = vrot.lane.b32.xlu0 %v2987_v16, %s3089_s28  ;;  %v1288_v39 = vadd.f32 1.0, %v2993_v33 }
0x1ca5   :  { %v1788_v17 = vpop.permute.xlu1 %1787 }
0x1ca6   :  { %v1793_v1 = vmul.f32 %v2979_v5, %v1788_v17 }
0x1ca7   :  { %v1790_v18 = vpop.permute.xlu0 %1789 }
0x1ca8   :  { %v1794_v19 = vmul.f32 %v2981_v6, %v1790_v18 }
0x1caa   :  { %v1797_v44 = vpack.c.bf16 %v1794_v19, %v1793_v1 }
0x1cab   :  { %v1300_v40 = vpop.permute.xlu0 %1299 }
0x1cac   :  { %1799 = vrot.lane.b32.xlu1 %v1797_v44, %s3090_s29 }
0x1cb0   :  { %1301 = vrot.lane.b32.xlu1 %v2989_v24, %s3089_s28 }
0x1d1e   :  { %v1800_v7 = vpop.permute.xlu1 %1799 }
0x1d1f   :  { %2764 = vmatmul.mubr.msk.bf16.vlgmr.msra.gmra.mrb[44].mxu0 %vm375_vm3, %v1800_v7 }
0x1d20   :  { %2776 = vmatpush3.bf16.msra.mxu0 %v3514_v55  ;;  %2779 = vmatprep.mubr.msk.bf16.mxu0 %vm3088_vm1, %v3087_v25 }
0x1d21   :  { %2777 = vmatprep.subr.bf16.mxu0 %v3087_v25 }
0x1d22   :  { %v1302_v50 = vpop.permute.xlu1 %1301 }
0x1d24   :  { %2778 = vmatpush3.bf16.msra.mxu0 %v3524_v61 }
0x1d25   :  { %2791 = vmatprep.subr.bf16.mxu0 %v3087_v25 }
0x1df2   :  { %v1838_v10 = vpop.f32.mrb[44].mxu0 }
0x1df3   :  { %v1845_v35 = vadd.f32 %v1838_v10, %v1441_v32  ;;  %v2765_v36 = vpop.f32.mrb[45].mxu0 }
0x1df4   :  { %v1841_v56 = vpop.f32.mrb[46].mxu0 }
0x1df5   :  { %2994 = vtanh.f32 %v1845_v35  ;;  %v1846_v37 = vadd.f32 %v1841_v56, %v1444_v34  ;;  %v2766_v8 = vpop.f32.mrb[47].mxu0  ;;  %v2481_v53 = vmul.f32 -1.442695, %v1845_v35 }
0x1df6   :  { %2996 = vrcp.f32 %v1287_v52 }
0x1df7   :  { %2998 = vtanh.f32 %v1846_v37  ;;  %v2482_v45 = vmul.f32 -1.442695, %v1846_v37  ;;  %v1449_v37 = vadd.f32 %v3554_v12, %v3490_v28 }
0x1df8   :  { %3000 = vrcp.f32 %v1288_v39  ;;  %v1452_v39 = vadd.f32 %v3554_v12, %v3494_v30 }
0x1df9   :  { %3002 = vpow2.f32 %v2481_v53 }
0x1dfa   :  { %3004 = vpow2.f32 %v2482_v45 }
0x1dff   :  { %v2995_v11 = vpop.eup %2994 }
0x1e00   :  { %1865 = vrot.lane.b32.xlu0 %v2995_v11, %s3089_s28  ;;  %v2997_v62 = vpop.eup %2996 }
0x1e01   :  { %v2999_v42 = vpop.eup %2998  ;;  %v1305_v43 = vmul.f32 %v2997_v62, %v1300_v40  ;;  %v1295_v54 = vmul.f32 %v2997_v62, %v3499_v46 }
0x1e02   :  { %1867 = vrot.lane.b32.xlu1 %v2999_v42, %s3089_s28  ;;  %v3001_v3 = vpop.eup %3000 }
0x1e03   :  { %v1306_v51 = vmul.f32 %v3001_v3, %v1302_v50  ;;  %v3003_v49 = vpop.eup %3002  ;;  %v1296_v41 = vmul.f32 %v3001_v3, %v3503_v47 }
0x1e04   :  { %1309 = vrot.lane.b32.xlu0 %v1305_v43, %s3090_s29  ;;  %v3005_v57 = vpop.eup %3004  ;;  %v1853_v59 = vadd.f32 1.0, %v3003_v49 }
0x1e05   :  { %v1854_v63 = vadd.f32 1.0, %v3005_v57 }
0x1e06   :  { %1311 = vrot.lane.b32.xlu1 %v1306_v51, %s3090_s29  ;;  %3006 = vrcp.f32 %v1853_v59 }
0x1e07   :  { %3008 = vrcp.f32 %v1854_v63 }
0x1e10   :  { %v3007_v26 = vpop.eup %3006 }
0x1e11   :  { %v3009_v4 = vpop.eup %3008  ;;  %v1861_v22 = vmul.f32 %v3007_v26, %v3600_v13 }
0x1e12   :  { %v1862_v16 = vmul.f32 %v3009_v4, %v3603_v15 }
0x1e72   :  { %v1866_v2 = vpop.permute.xlu0 %1865 }
0x1e73   :  { %v1871_v48 = vmul.f32 %v3007_v26, %v1866_v2 }
0x1e74   :  { %v1868_v5 = vpop.permute.xlu1 %1867 }
0x1e75   :  { %1875 = vrot.lane.b32.xlu0 %v1871_v48, %s3090_s29  ;;  %v1872_v38 = vmul.f32 %v3009_v4, %v1868_v5 }
0x1e76   :  { %v1310_v6 = vpop.permute.xlu0 %1309 }
0x1e77   :  { %v1315_v58 = vadd.f32 %v1310_v6, %v1295_v54  ;;  %1877 = vrot.lane.b32.xlu1 %v1872_v38, %s3090_s29 }
0x1e78   :  { %v1312_v9 = vpop.permute.xlu1 %1311 }
0x1e79   :  { %3010 = vtanh.f32 %v1315_v58  ;;  %v1316_v0 = vadd.f32 %v1312_v9, %v1296_v41 }
0x1e7b   :  { %3012 = vtanh.f32 %v1316_v0 }
0x1e83   :  { %v3011_v14 = vpop.eup %3010 }
0x1e84   :  { %1321 = vrot.lane.b32.xlu0 %v3011_v14, %s3089_s28 }
0x1e85   :  { %v3013_v20 = vpop.eup %3012 }
0x1e86   :  { %1323 = vrot.lane.b32.xlu1 %v3013_v20, %s3089_s28 }
0x1ee7   :  { %v1876_v46 = vpop.permute.xlu0 %1875 }
0x1ee8   :  { %v3637_v60 = vadd.f32 %v1876_v46, %v1861_v22 }
0x1ee9   :  { %v1878_v47 = vpop.permute.xlu1 %1877 }
0x1eea   :  { %3014 = vtanh.f32 %v3637_v60  ;;  %v3641_v17 = vadd.f32 %v1878_v47, %v1862_v16  ;;  %v1457_v16 = vadd.f32 %v3488_v27, %v3554_v12 }
0x1eec   :  { %3016 = vtanh.f32 %v3641_v17 }
0x1ef4   :  { %v3015_v18 = vpop.eup %3014 }
0x1ef5   :  { %1887 = vrot.lane.b32.xlu0 %v3015_v18, %s3089_s28 }
0x1ef6   :  { %v3017_v1 = vpop.eup %3016  ;;  %v1322_v19 = vpop.permute.xlu0 %1321 }
0x1ef7   :  { %1889 = vrot.lane.b32.xlu1 %v3017_v1, %s3089_s28  ;;  %v1327_v44 = vmul.f32 %v2997_v62, %v1322_v19 }
0x1ef8   :  { %v1324_v13 = vpop.permute.xlu1 %1323 }
0x1ef9   :  { %v1328_v24 = vmul.f32 %v3001_v3, %v1324_v13 }
0x1efb   :  { %v1329_v7 = vpack.c.bf16 %v1328_v24, %v1327_v44 }
0x1efd   :  { %1331 = vrot.lane.b32.xlu0 %v1329_v7, %s3090_s29 }
0x1f67   :  { %v1888_v15 = vpop.permute.xlu0 %1887 }
0x1f68   :  { %v1893_v31 = vmul.f32 %v3007_v26, %v1888_v15 }
0x1f69   :  { %v1890_v21 = vpop.permute.xlu1 %1889 }
0x1f6a   :  { %v1894_v23 = vmul.f32 %v3009_v4, %v1890_v21 }
0x1f6c   :  { %v1897_v32 = vpack.c.bf16 %v1894_v23, %v1893_v31 }
0x1f6e   :  { %1899 = vrot.lane.b32.xlu1 %v1897_v32, %s3090_s29 }
0x1f6f   :  { %v1332_v10 = vpop.permute.xlu0 %1331 }
0x1f70   :  { %1334 = vst.msk [vmem:[#allocation3 + $0x38] sm:$0xff] %vm375_vm3, %v1332_v10 }
0x1f77   :  { %v1342_v33 = vld [vmem:[#allocation3 + $0x38] sm:$0xff] }
0x1f78   :  { %2732 = vmatmul.mubr.msk.bf16.gmra.mrb[44].mxu1 %vm375_vm3, %v1342_v33 }
0x1f79   :  { %2771 = vmatprep.mubr.msk.bf16.mxu1 %vm3088_vm1, %v3087_v25 }
0x1fe0   :  { %v1900_v34 = vpop.permute.xlu1 %1899 }
0x1fe1   :  { %2772 = vmatmul.mubr.msk.bf16.vlgmr.msra.gmra.mrb[48].mxu1 %vm375_vm3, %v1900_v34 }
0x1fe2   :  { %2784 = vmatpush3.bf16.msra.mxu1 %v3514_v55  ;;  %2787 = vmatprep.mubr.msk.bf16.mxu1 %vm3088_vm1, %v3087_v25 }
0x1fe3   :  { %2785 = vmatprep.subr.bf16.mxu1 %v3087_v25 }
0x1fe6   :  { %2786 = vmatpush3.bf16.msra.mxu1 %v3524_v61 }
0x1fe7   :  { %2799 = vmatprep.subr.bf16.mxu1 %v3087_v25 }
0x204b   :  { %v3659_v52 = vpop.f32.mrb[44].mxu1 }
0x204c   :  { %v3661_v35 = vpop.f32.mrb[45].mxu1 }
0x204d   :  { %v3663_v36 = vpop.f32.mrb[46].mxu1 }
0x204e   :  { %v3665_v56 = vpop.f32.mrb[47].mxu1 }
0x20b4   :  { %v1938_v8 = vpop.f32.mrb[48].mxu1 }
0x20b5   :  { %v1945_v11 = vadd.f32 %v1938_v8, %v1449_v37  ;;  %v2773_v40 = vpop.f32.mrb[49].mxu1 }
0x20b6   :  { %v1941_v62 = vpop.f32.mrb[50].mxu1 }
0x20b7   :  { %3018 = vtanh.f32 %v1945_v11  ;;  %v1946_v42 = vadd.f32 %v1941_v62, %v1452_v39  ;;  %v2774_v43 = vpop.f32.mrb[51].mxu1  ;;  %v2484_v51 = vmul.f32 -1.442695, %v1945_v11 }
0x20b9   :  { %3020 = vtanh.f32 %v1946_v42  ;;  %v2485_v53 = vmul.f32 -1.442695, %v1946_v42 }
0x20ba   :  { %3022 = vpow2.f32 %v2484_v51 }
0x20bb   :  { %3024 = vpow2.f32 %v2485_v53 }
0x20c1   :  { %v3019_v50 = vpop.eup %3018 }
0x20c2   :  { %1965 = vrot.lane.b32.xlu0 %v3019_v50, %s3089_s28 }
0x20c3   :  { %v3021_v3 = vpop.eup %3020 }
0x20c4   :  { %1967 = vrot.lane.b32.xlu1 %v3021_v3, %s3089_s28  ;;  %v3023_v28 = vpop.eup %3022 }
0x20c5   :  { %v3025_v45 = vpop.eup %3024  ;;  %v1953_v30 = vadd.f32 1.0, %v3023_v28 }
0x20c6   :  { %v1954_v49 = vadd.f32 1.0, %v3025_v45 }
0x20c7   :  { %3026 = vrcp.f32 %v1953_v30  ;;  %v1465_v30 = vadd.f32 %v3554_v12, %v3661_v35 }
0x20c8   :  { %3028 = vrcp.f32 %v1954_v49 }
0x20d1   :  { %v3027_v57 = vpop.eup %3026 }
0x20d2   :  { %v3029_v26 = vpop.eup %3028  ;;  %v1961_v4 = vmul.f32 %v3027_v57, %v3637_v60 }
0x20d3   :  { %v1962_v38 = vmul.f32 %v3029_v26, %v3641_v17  ;;  %v1460_v17 = vadd.f32 %v3492_v29, %v3554_v12 }
0x2134   :  { %v1966_v59 = vpop.permute.xlu0 %1965 }
0x2135   :  { %v1971_v63 = vmul.f32 %v3027_v57, %v1966_v59 }
0x2136   :  { %v1968_v2 = vpop.permute.xlu1 %1967 }
0x2137   :  { %1975 = vrot.lane.b32.xlu0 %v1971_v63, %s3090_s29  ;;  %v1972_v48 = vmul.f32 %v3029_v26, %v1968_v2 }
0x2139   :  { %1977 = vrot.lane.b32.xlu1 %v1972_v48, %s3090_s29 }
0x21a9   :  { %v1976_v5 = vpop.permute.xlu0 %1975 }
0x21aa   :  { %v1981_v54 = vadd.f32 %v1976_v5, %v1961_v4 }
0x21ab   :  { %v1978_v6 = vpop.permute.xlu1 %1977 }
0x21ac   :  { %3030 = vtanh.f32 %v1981_v54  ;;  %v1982_v58 = vadd.f32 %v1978_v6, %v1962_v38 }
0x21ae   :  { %3032 = vtanh.f32 %v1982_v58 }
0x21b6   :  { %v3031_v41 = vpop.eup %3030 }
0x21b7   :  { %1987 = vrot.lane.b32.xlu0 %v3031_v41, %s3089_s28 }
0x21b8   :  { %v3033_v9 = vpop.eup %3032 }
0x21b9   :  { %1989 = vrot.lane.b32.xlu1 %v3033_v9, %s3089_s28 }
0x2229   :  { %v1988_v0 = vpop.permute.xlu0 %1987 }
0x222a   :  { %v1993_v20 = vmul.f32 %v3027_v57, %v1988_v0  ;;  %v1468_v57 = vadd.f32 %v3554_v12, %v3665_v56 }
0x222b   :  { %v1990_v14 = vpop.permute.xlu1 %1989 }
0x222c   :  { %v1994_v22 = vmul.f32 %v3029_v26, %v1990_v14 }
0x222e   :  { %v1997_v46 = vpack.c.bf16 %v1994_v22, %v1993_v20 }
0x2230   :  { %1999 = vrot.lane.b32.xlu0 %v1997_v46, %s3090_s29 }
0x22a2   :  { %v2000_v60 = vpop.permute.xlu0 %1999 }
0x22a3   :  { %2780 = vmatmul.mubr.msk.bf16.vlgmr.msra.gmra.mrb[48].mxu0 %vm375_vm3, %v2000_v60 }
0x22a4   :  { %2792 = vmatpush3.bf16.msra.mxu0 %v3514_v55  ;;  %2795 = vmatprep.mubr.msk.bf16.mxu0 %vm3088_vm1, %v3087_v25 }
0x22a5   :  { %2793 = vmatprep.subr.bf16.mxu0 %v3087_v25 }
0x22a8   :  { %2794 = vmatpush3.bf16.msra.mxu0 %v3524_v61 }
0x2376   :  { %v2038_v47 = vpop.f32.mrb[48].mxu0 }
0x2377   :  { %v2045_v18 = vadd.f32 %v2038_v47, %v1457_v16  ;;  %v2781_v1 = vpop.f32.mrb[49].mxu0 }
0x2378   :  { %v2041_v19 = vpop.f32.mrb[50].mxu0 }
0x2379   :  { %3034 = vtanh.f32 %v2045_v18  ;;  %v2046_v13 = vadd.f32 %v2041_v19, %v1460_v17  ;;  %v2782_v55 = vpop.f32.mrb[51].mxu0  ;;  %v2487_v61 = vmul.f32 -1.442695, %v2045_v18 }
0x237b   :  { %3036 = vtanh.f32 %v2046_v13  ;;  %v2488_v7 = vmul.f32 -1.442695, %v2046_v13 }
0x237c   :  { %3038 = vpow2.f32 %v2487_v61 }
0x237d   :  { %3040 = vpow2.f32 %v2488_v7 }
0x2383   :  { %v3035_v44 = vpop.eup %3034 }
0x2384   :  { %2065 = vrot.lane.b32.xlu1 %v3035_v44, %s3089_s28 }
0x2385   :  { %v3037_v24 = vpop.eup %3036 }
0x2386   :  { %2067 = vrot.lane.b32.xlu0 %v3037_v24, %s3089_s28  ;;  %v3039_v27 = vpop.eup %3038 }
0x2387   :  { %v3041_v15 = vpop.eup %3040  ;;  %v2053_v29 = vadd.f32 1.0, %v3039_v27  ;;  %v1473_v27 = vadd.f32 %v3659_v52, %v3554_v12 }
0x2388   :  { %v2054_v21 = vadd.f32 1.0, %v3041_v15 }
0x2389   :  { %3042 = vrcp.f32 %v2053_v29  ;;  %v1476_v29 = vadd.f32 %v3663_v36, %v3554_v12 }
0x238a   :  { %3044 = vrcp.f32 %v2054_v21 }
0x2393   :  { %v3043_v31 = vpop.eup %3042 }
0x2394   :  { %v3045_v10 = vpop.eup %3044  ;;  %v2061_v37 = vmul.f32 %v3043_v31, %v1981_v54 }
0x2395   :  { %v2062_v11 = vmul.f32 %v3045_v10, %v1982_v58 }
0x23f6   :  { %v2066_v23 = vpop.permute.xlu1 %2065 }
0x23f7   :  { %v2071_v32 = vmul.f32 %v3043_v31, %v2066_v23 }
0x23f8   :  { %v2068_v33 = vpop.permute.xlu0 %2067 }
0x23f9   :  { %2075 = vrot.lane.b32.xlu1 %v2071_v32, %s3090_s29  ;;  %v2072_v34 = vmul.f32 %v3045_v10, %v2068_v33 }
0x23fb   :  { %2077 = vrot.lane.b32.xlu0 %v2072_v34, %s3090_s29 }
0x246b   :  { %v2076_v8 = vpop.permute.xlu1 %2075 }
0x246c   :  { %v2081_v39 = vadd.f32 %v2076_v8, %v2061_v37 }
0x246d   :  { %v2078_v40 = vpop.permute.xlu0 %2077 }
0x246e   :  { %3046 = vtanh.f32 %v2081_v39  ;;  %v2082_v62 = vadd.f32 %v2078_v40, %v2062_v11 }
0x2470   :  { %3048 = vtanh.f32 %v2082_v62 }
0x2478   :  { %v3047_v42 = vpop.eup %3046 }
0x2479   :  { %2087 = vrot.lane.b32.xlu1 %v3047_v42, %s3089_s28 }
0x247a   :  { %v3049_v43 = vpop.eup %3048 }
0x247b   :  { %2089 = vrot.lane.b32.xlu0 %v3049_v43, %s3089_s28 }
0x24eb   :  { %v2088_v50 = vpop.permute.xlu1 %2087 }
0x24ec   :  { %v2093_v51 = vmul.f32 %v3043_v31, %v2088_v50 }
0x24ed   :  { %v2090_v3 = vpop.permute.xlu0 %2089 }
0x24ee   :  { %v2094_v53 = vmul.f32 %v3045_v10, %v2090_v3 }
0x24f0   :  { %v2097_v28 = vpack.c.bf16 %v2094_v53, %v2093_v51 }
0x24f2   :  { %2099 = vrot.lane.b32.xlu1 %v2097_v28, %s3090_s29 }
0x2564   :  { %v2100_v45 = vpop.permute.xlu1 %2099 }
0x2565   :  { %2788 = vmatmul.mubr.msk.bf16.vlgmr.msra.gmra.mrb[52].mxu1 %vm375_vm3, %v2100_v45 }
0x2566   :  { %2803 = vmatprep.mubr.msk.bf16.mxu1 %vm3088_vm1, %v3087_v25 }
0x2638   :  { %v2138_v49 = vpop.f32.mrb[52].mxu1 }
0x2639   :  { %v2145_v59 = vadd.f32 %v2138_v49, %v1465_v30  ;;  %v2789_v63 = vpop.f32.mrb[53].mxu1  ;;  %v2296_v49 = vld [vmem:[%s3759_s5] sm:$0xff] }
0x263a   :  { %v2141_v26 = vpop.f32.mrb[54].mxu1 }
0x263b   :  { %3050 = vtanh.f32 %v2145_v59  ;;  %v2146_v2 = vadd.f32 %v2141_v26, %v1468_v57  ;;  %v2790_v48 = vpop.f32.mrb[55].mxu1  ;;  %v2490_v54 = vmul.f32 -1.442695, %v2145_v59  ;;  %v2297_v57 = vld [vmem:[%s3759_s5 + $0x8] sm:$0xff]  ;;  %v2298_v59 = vld [vmem:[%s3759_s5 + $0x10] sm:$0xff]  ;;  %v2299_v26 = vld [vmem:[%s3759_s5 + $0x18] sm:$0xff] }
0x263c   :  { %v2300_v63 = vpack.c.bf16 %v2297_v57, %v2296_v49 }
0x263d   :  { %3052 = vtanh.f32 %v2146_v2  ;;  %v2491_v38 = vmul.f32 -1.442695, %v2146_v2  ;;  %v2301_v2 = vpack.c.bf16 %v2299_v26, %v2298_v59 }
0x263e   :  { %3054 = vpow2.f32 %v2490_v54  ;;  %2800 = vmatpush3.bf16.msra.mxu1 %v2300_v63 }
0x263f   :  { %3056 = vpow2.f32 %v2491_v38  ;;  %2801 = vmatprep.subr.bf16.mxu1 %v3087_v25  ;;  %v14_v25 = vstv %s3760_s8 }
0x2640   :  { %15 = vst [vmem:[#allocation4] sm:$0x1] %v14_v25 }
0x2642   :  { %2802 = vmatpush3.bf16.msra.mxu1 %v2301_v2 }
0x2645   :  { %v3051_v4 = vpop.eup %3050 }
0x2646   :  { %2165 = vrot.lane.b32.xlu0 %v3051_v4, %s3089_s28 }
0x2647   :  { %v3053_v5 = vpop.eup %3052 }
0x2648   :  { %2167 = vrot.lane.b32.xlu1 %v3053_v5, %s3089_s28  ;;  %v3055_v35 = vpop.eup %3054 }
0x2649   :  { %v3057_v6 = vpop.eup %3056  ;;  %v2153_v56 = vadd.f32 1.0, %v3055_v35 }
0x264a   :  { %v2154_v58 = vadd.f32 1.0, %v3057_v6 }
0x264b   :  { %3058 = vrcp.f32 %v2153_v56 }
0x264c   :  { %3060 = vrcp.f32 %v2154_v58  ;;  %v2495_v58 = vld [vmem:[%s3761_s6] ss:$0 sm:$0xff] }
0x2655   :  { %v3059_v41 = vpop.eup %3058 }
0x2656   :  { %v3061_v14 = vpop.eup %3060  ;;  %v2161_v46 = vmul.f32 %v3059_v41, %v2081_v39 }
0x2657   :  { %v2162_v47 = vmul.f32 %v3061_v14, %v2082_v62 }
0x26b8   :  { %v2166_v9 = vpop.permute.xlu0 %2165 }
0x26b9   :  { %v2171_v0 = vmul.f32 %v3059_v41, %v2166_v9 }
0x26ba   :  { %v2168_v20 = vpop.permute.xlu1 %2167 }
0x26bb   :  { %2175 = vrot.lane.b32.xlu0 %v2171_v0, %s3090_s29  ;;  %v2172_v22 = vmul.f32 %v3061_v14, %v2168_v20 }
0x26bd   :  { %2177 = vrot.lane.b32.xlu1 %v2172_v22, %s3090_s29 }
0x272d   :  { %v2176_v60 = vpop.permute.xlu0 %2175 }
0x272e   :  { %v2181_v16 = vadd.f32 %v2176_v60, %v2161_v46  ;;  %v2497_v46 = vld [vmem:[%s3762_s7] ss:$0 sm:$0xff] }
0x272f   :  { %v2178_v17 = vpop.permute.xlu1 %2177 }
0x2730   :  { %3062 = vtanh.f32 %v2181_v16  ;;  %v2182_v18 = vadd.f32 %v2178_v17, %v2162_v47 }
0x2732   :  { %3064 = vtanh.f32 %v2182_v18 }
0x273a   :  { %v3063_v1 = vpop.eup %3062 }
0x273b   :  { %2187 = vrot.lane.b32.xlu0 %v3063_v1, %s3089_s28 }
0x273c   :  { %v3065_v19 = vpop.eup %3064 }
0x273d   :  { %2189 = vrot.lane.b32.xlu1 %v3065_v19, %s3089_s28  ;;  %v2498_v19 = vld [vmem:[#allocation4] ss:$0 sm:$0xff] }
0x27ad   :  { %v2188_v13 = vpop.permute.xlu0 %2187 }
0x27ae   :  { %v2193_v44 = vmul.f32 %v3059_v41, %v2188_v13 }
0x27af   :  { %v2190_v55 = vpop.permute.xlu1 %2189 }
0x27b0   :  { %v2194_v24 = vmul.f32 %v3061_v14, %v2190_v55 }
0x27b2   :  { %v2197_v61 = vpack.c.bf16 %v2194_v24, %v2193_v44 }
0x27b4   :  { %2199 = vrot.lane.b32.xlu0 %v2197_v61, %s3090_s29 }
0x2826   :  { %v2200_v7 = vpop.permute.xlu0 %2199 }
0x2827   :  { %2796 = vmatmul.mubr.msk.bf16.vlgmr.msra.gmra.mrb[52].mxu0 %vm375_vm3, %v2200_v7 }
0x28fa   :  { %v2238_v15 = vpop.f32.mrb[52].mxu0 }
0x28fb   :  { %v2245_v21 = vadd.f32 %v2238_v15, %v1473_v27  ;;  %v2797_v31 = vpop.f32.mrb[53].mxu0 }
0x28fc   :  { %v2241_v23 = vpop.f32.mrb[54].mxu0 }
0x28fd   :  { %3066 = vtanh.f32 %v2245_v21  ;;  %v2246_v32 = vadd.f32 %v2241_v23, %v1476_v29  ;;  %v2798_v10 = vpop.f32.mrb[55].mxu0  ;;  %v2493_v37 = vmul.f32 -1.442695, %v2245_v21 }
0x28ff   :  { %3068 = vtanh.f32 %v2246_v32  ;;  %v2494_v8 = vmul.f32 -1.442695, %v2246_v32 }
0x2900   :  { %3070 = vpow2.f32 %v2493_v37 }
0x2901   :  { %3072 = vpow2.f32 %v2494_v8 }
0x2907   :  { %v3067_v33 = vpop.eup %3066 }
0x2908   :  { %2265 = vrot.lane.b32.xlu1 %v3067_v33, %s3089_s28 }
0x2909   :  { %v3069_v34 = vpop.eup %3068 }
0x290a   :  { %2267 = vrot.lane.b32.xlu0 %v3069_v34, %s3089_s28  ;;  %v3071_v52 = vpop.eup %3070 }
0x290b   :  { %v3073_v39 = vpop.eup %3072  ;;  %v2253_v12 = vadd.f32 1.0, %v3071_v52 }
0x290c   :  { %v2254_v36 = vadd.f32 1.0, %v3073_v39 }
0x290d   :  { %3074 = vrcp.f32 %v2253_v12 }
0x290e   :  { %3076 = vrcp.f32 %v2254_v36 }
0x2917   :  { %v3075_v11 = vpop.eup %3074 }
0x2918   :  { %v3077_v42 = vpop.eup %3076  ;;  %v2261_v3 = vmul.f32 %v3075_v11, %v2181_v16 }
0x2919   :  { %v2262_v28 = vmul.f32 %v3077_v42, %v2182_v18 }
0x297a   :  { %v2266_v40 = vpop.permute.xlu1 %2265 }
0x297b   :  { %v2271_v62 = vmul.f32 %v3075_v11, %v2266_v40 }
0x297c   :  { %v2268_v43 = vpop.permute.xlu0 %2267 }
0x297d   :  { %2275 = vrot.lane.b32.xlu1 %v2271_v62, %s3090_s29  ;;  %v2272_v50 = vmul.f32 %v3077_v42, %v2268_v43 }
0x297f   :  { %2277 = vrot.lane.b32.xlu0 %v2272_v50, %s3090_s29 }
0x29ef   :  { %v2276_v51 = vpop.permute.xlu1 %2275 }
0x29f0   :  { %v2281_v53 = vadd.f32 %v2276_v51, %v2261_v3 }
0x29f1   :  { %v2278_v45 = vpop.permute.xlu0 %2277 }
0x29f2   :  { %3078 = vtanh.f32 %v2281_v53  ;;  %v2282_v30 = vadd.f32 %v2278_v45, %v2262_v28 }
0x29f4   :  { %3080 = vtanh.f32 %v2282_v30 }
0x29fc   :  { %v3079_v48 = vpop.eup %3078 }
0x29fd   :  { %2287 = vrot.lane.b32.xlu1 %v3079_v48, %s3089_s28 }
0x29fe   :  { %v3081_v4 = vpop.eup %3080 }
0x29ff   :  { %2289 = vrot.lane.b32.xlu0 %v3081_v4, %s3089_s28 }
0x2a6f   :  { %v2288_v5 = vpop.permute.xlu1 %2287 }
0x2a70   :  { %v2293_v38 = vmul.f32 %v3075_v11, %v2288_v5 }
0x2a71   :  { %v2290_v54 = vpop.permute.xlu0 %2289 }
0x2a72   :  { %v2294_v35 = vmul.f32 %v3077_v42, %v2290_v54 }
0x2a74   :  { %v2295_v6 = vpack.c.bf16 %v2294_v35, %v2293_v38 }
0x2a76   :  { %2310 = vrot.lane.b32.xlu1 %v2295_v6, %s3090_s29 }
0x2ae8   :  { %v2311_v56 = vpop.permute.xlu1 %2310 }
0x2ae9   :  { %2804 = vmatmul.mubr.msk.bf16.vlgmr.msra.gmra.mrb[56].mxu1 %vm375_vm3, %v2311_v56 }
0x2bbc   :  { %v2349_v41 = vpop.f32.mrb[56].mxu1 }
0x2bbd   :  { %v2350_v9 = vadd.f32 %v2495_v58, %v2349_v41  ;;  %v2805_v0 = vpop.f32.mrb[57].mxu1 }
0x2bbe   :  { %v2352_v14 = vpop.f32.mrb[58].mxu1 }
0x2bbf   :  { %3082 = vtanh.f32 %v2350_v9  ;;  %v2353_v20 = vadd.f32 %v2495_v58, %v2352_v14  ;;  %v2806_v22 = vpop.f32.mrb[59].mxu1 }
0x2bc1   :  { %3084 = vtanh.f32 %v2353_v20 }
0x2bc9   :  { %v3083_v60 = vpop.eup %3082 }
0x2bca   :  { %v2365_v16 = vmul.f32 %v3083_v60, %v2497_v46 }
0x2bcb   :  { %v3085_v47 = vpop.eup %3084 }
0x2bcc   :  { %v2367_v17 = vsel %vm375_vm3, %v2365_v16, 0.0  ;;  %v2366_v18 = vmul.f32 %v3085_v47, %v2497_v46 }
0x2bcd   :  { %2368 = vadd.xlane.f32.xlu0 %v2367_v17 }
0x2bce   :  { %v2370_v1 = vsel %vm375_vm3, %v2366_v18, 0.0 }
0x2bcf   :  { %2371 = vadd.xlane.f32.xlu1 %v2370_v1 }
0x2c5a   :  { %v2369_v13 = vpop.xlane.xlu0 %2368 }
0x2c5b   :  { %v2380_v55 = vadd.f32 %v2498_v19, %v2369_v13 }
0x2c5c   :  { %v2372_v44 = vpop.xlane.xlu1 %2371 }
0x2c5d   :  { %2383 = vst.msk [vmem:[%s3763_s9] sm:$0xff] %vm2382_vm4, %v2380_v55  ;;  %v2381_v24 = vadd.f32 %v2498_v19, %v2372_v44 }
0x2c5f   :  { %2384 = vst.msk [vmem:[%s3763_s9 + $0x8] sm:$0xff] %vm2382_vm4, %v2381_v24 }

</bundles_post_ra>
